<compile_context>
chip_gen: v7x
topology: tpu7x:2x2x1
jax: 0.10.0
libtpu: 0.0.40
codegen_flags: <defaults>
</compile_context>

<pallas_src>
import jax
import jax.numpy as jnp
import numpy as np
from jax import lax
from jax.experimental import pallas as pl
from jax.experimental.pallas import tpu as pltpu

HIDDEN = 32   # hidden_size
VOCAB = 64    # output_size


# ---------------------------------------------------------------------------
# Kernel: single grid step; all T decode steps run inside via unrolled loops.
# ---------------------------------------------------------------------------
def decoder_kernel(tokens_ref,                      # SMEM (T,) int32 (scalar prefetch)
                   emb_ref,                         # VMEM (V, H) embedding table
                   w_i_ref,                         # VMEM (H, 3H)  [Wir|Wiz|Win]^T
                   w_h_ref,                         # VMEM (H, 3H)  [Whr|Whz|Whn]^T
                   b_i_ref,                         # VMEM (1, 3H)  [bir+bhr | biz+bhz | bin]
                   b_h_ref,                         # VMEM (1, 3H)  [0 | 0 | bhn]
                   w_out_ref, b_out_ref,            # VMEM (H, V), (1, V)
                   h0_ref,                          # VMEM (1, H) initial hidden
                   logp_ref, hout_ref,              # outputs (T, V), (1, H)
                   x_sc,                            # VMEM scratch (T, H)   relu(emb[tok])
                   gi_sc,                           # VMEM scratch (T, 3H)  input-side gates
                   h_seq_sc):                       # VMEM scratch (T, H)   all h_new rows
    T, H = x_sc.shape
    V = emb_ref.shape[0]

    # --- Batched embedding gather + ReLU (outside the serial chain). ------------
    # Token index clamped: VMEM refs are not bounds-checked, so an out-of-range
    # token would silently read adjacent VMEM otherwise.
    def gather(i, carry):
        tok = jnp.clip(tokens_ref[i], 0, V - 1)
        x_sc[pl.ds(i, 1), :] = jnp.maximum(emb_ref[pl.ds(tok, 1), :], 0.0)
        return carry
    lax.fori_loop(0, T, gather, 0, unroll=True)

    # --- One batched input-side projection for all T steps: (T,H)x(H,3H). -------
    gi_sc[...] = (jnp.dot(x_sc[...], w_i_ref[...],
                          preferred_element_type=jnp.float32)
                  + b_i_ref[...])

    # --- Serial recurrence: one (1,H)x(H,3H) matmul + elementwise per step. ------
    def step(t, h):
        gh = (jnp.dot(h, w_h_ref[...], preferred_element_type=jnp.float32)
              + b_h_ref[...])
        gi_t = gi_sc[pl.ds(t, 1), :]
        r = jax.nn.sigmoid(gi_t[:, 0:H] + gh[:, 0:H])
        z = jax.nn.sigmoid(gi_t[:, H:2 * H] + gh[:, H:2 * H])
        n = jnp.tanh(gi_t[:, 2 * H:3 * H] + r * gh[:, 2 * H:3 * H])
        h_new = (1.0 - z) * n + z * h
        h_seq_sc[pl.ds(t, 1), :] = h_new
        return h_new

    h_final = lax.fori_loop(0, T, step, h0_ref[...], unroll=True)
    hout_ref[...] = h_final                       # single final-hidden store

    # --- Batched output projection + log-softmax, one dense (T, V) store. -------
    logits = (jnp.dot(h_seq_sc[...], w_out_ref[...],
                      preferred_element_type=jnp.float32)
              + b_out_ref[...])
    m = jnp.max(logits, axis=-1, keepdims=True)
    s = logits - m
    lse = jnp.log(jnp.sum(jnp.exp(s), axis=-1, keepdims=True))
    logp_ref[...] = s - lse


# ---------------------------------------------------------------------------
# Parameters (PyTorch layout) + one-time preparation into kernel layout.
# ---------------------------------------------------------------------------
def init_params(key, hidden_size=HIDDEN, output_size=VOCAB):
    ks = jax.random.split(key, 8)
    scale = 0.1
    return {
        # nn.Embedding(output_size, hidden_size)
        "embedding": scale * jax.random.normal(ks[0], (output_size, hidden_size), jnp.float32),
        # nn.GRU(hidden, hidden): weight_ih_l0 (3H, H), weight_hh_l0 (3H, H), biases (3H,)
        "w_ih": scale * jax.random.normal(ks[1], (3 * hidden_size, hidden_size), jnp.float32),
        "w_hh": scale * jax.random.normal(ks[2], (3 * hidden_size, hidden_size), jnp.float32),
        "b_ih": scale * jax.random.normal(ks[3], (3 * hidden_size,), jnp.float32),
        "b_hh": scale * jax.random.normal(ks[4], (3 * hidden_size,), jnp.float32),
        # nn.Linear(hidden, output_size)
        "w_out": scale * jax.random.normal(ks[5], (output_size, hidden_size), jnp.float32),
        "b_out": scale * jax.random.normal(ks[6], (output_size,), jnp.float32),
    }


def prepare_params(params, hidden_size=HIDDEN, output_size=VOCAB):
    """One-time prep (never per step):
      * GRU weights pre-transposed to (in, out): w_i = w_ih.T, w_h = w_hh.T
        (columns already in PyTorch gate order r | z | n).
      * r/z biases pre-summed (b_ir+b_hr, b_iz+b_hz); b_in stays on the input
        side and b_hn stays on the hidden side (it sits inside r*(...)).
      * Output weight pre-transposed to (H, V); biases reshaped to 2-D rows.
    """
    H, V = hidden_size, output_size
    b_ih, b_hh = params["b_ih"], params["b_hh"]
    b_i = jnp.concatenate([b_ih[0:H] + b_hh[0:H],
                           b_ih[H:2 * H] + b_hh[H:2 * H],
                           b_ih[2 * H:3 * H]]).reshape(1, 3 * H)
    b_h = jnp.concatenate([jnp.zeros((2 * H,), jnp.float32),
                           b_hh[2 * H:3 * H]]).reshape(1, 3 * H)
    return {
        "emb": params["embedding"],                  # (V, H)
        "w_i": params["w_ih"].T,                     # (H, 3H)
        "w_h": params["w_hh"].T,                     # (H, 3H)
        "b_i": b_i,                                  # (1, 3H)
        "b_h": b_h,                                  # (1, 3H)
        "w_out": params["w_out"].T,                  # (H, V)
        "b_out": params["b_out"].reshape(1, V),      # (1, V)
    }


# ---------------------------------------------------------------------------
# Fused multi-step decode: ONE pallas_call, ONE grid step, for T decoder steps.
# ---------------------------------------------------------------------------
def decoder_decode(tokens, hidden, prep):
    """tokens: int32 (T,); hidden: f32 (1, 1, H).
    Returns (logp (T, V), final hidden (1, 1, H))."""
    H, V = HIDDEN, VOCAB
    T = int(tokens.shape[0])
    h0 = hidden.reshape(1, H)

    inv = lambda i, toks: (0, 0)   # everything block-invariant / VMEM-resident

    grid_spec = pltpu.PrefetchScalarGridSpec(
        num_scalar_prefetch=1,                       # tokens -> SMEM
        grid=(1,),                                   # single step; loop lives in-kernel
        in_specs=[
            pl.BlockSpec((V, H), inv),               # embedding table
            pl.BlockSpec((H, 3 * H), inv),           # fused input-gate weights
            pl.BlockSpec((H, 3 * H), inv),           # fused hidden-gate weights
            pl.BlockSpec((1, 3 * H), inv),           # fused input-side biases
            pl.BlockSpec((1, 3 * H), inv),           # hidden-side bias (n gate only)
            pl.BlockSpec((H, V), inv),               # output weight
            pl.BlockSpec((1, V), inv),               # output bias
            pl.BlockSpec((1, H), inv),               # initial hidden
        ],
        out_specs=(
            pl.BlockSpec((T, V), inv),               # all log-probs, single dense store
            pl.BlockSpec((1, H), inv),               # final hidden
        ),
        scratch_shapes=[
            pltpu.VMEM((T, H), jnp.float32),         # relu(emb[tokens])
            pltpu.VMEM((T, 3 * H), jnp.float32),     # batched input-side gate pre-acts
            pltpu.VMEM((T, H), jnp.float32),         # all h_new rows (for batched output)
        ],
    )

    logp, h_out = pl.pallas_call(
        decoder_kernel,
        grid_spec=grid_spec,
        out_shape=(jax.ShapeDtypeStruct((T, V), jnp.float32),
                   jax.ShapeDtypeStruct((1, H), jnp.float32)),
        compiler_params=pltpu.CompilerParams(
            dimension_semantics=("arbitrary",)),     # serial recurrence: single TC
    )(tokens,
      prep["emb"], prep["w_i"], prep["w_h"], prep["b_i"], prep["b_h"],
      prep["w_out"], prep["b_out"], h0)

    return logp, h_out.reshape(1, 1, H)


def decoder_forward(token, hidden, prep):
    """Exact module forward: single step.  token: int32 (1,); hidden: (1, 1, H)."""
    logp, h_new = decoder_decode(token.reshape(1), hidden, prep)
    return logp.reshape(1, VOCAB), h_new


# ---------------------------------------------------------------------------
# Pure-JAX reference (reproduces the PyTorch forward exactly, stepped T times)
# ---------------------------------------------------------------------------
def decoder_forward_ref(token, hidden, params):
    H = HIDDEN
    x = jnp.maximum(params["embedding"][token].reshape(1, H), 0.0)
    h = hidden.reshape(1, H)
    gi = x @ params["w_ih"].T + params["b_ih"]
    gh = h @ params["w_hh"].T + params["b_hh"]
    r = jax.nn.sigmoid(gi[:, 0:H] + gh[:, 0:H])
    z = jax.nn.sigmoid(gi[:, H:2 * H] + gh[:, H:2 * H])
    n = jnp.tanh(gi[:, 2 * H:3 * H] + r * gh[:, 2 * H:3 * H])
    h_new = (1.0 - z) * n + z * h
    logits = h_new @ params["w_out"].T + params["b_out"]
    logp = jax.nn.log_softmax(logits, axis=1)
    return logp, h_new.reshape(1, 1, H)


def decoder_decode_ref(tokens, hidden, params):
    logps = []
    h = hidden
    for i in range(tokens.shape[0]):
        lp, h = decoder_forward_ref(int(tokens[i]), h, params)
        logps.append(lp)
    return jnp.concatenate(logps, axis=0), h


if __name__ == "__main__":
    key = jax.random.PRNGKey(0)
    params = init_params(key)
    prep = prepare_params(params)          # one-time weight prep (not per step)

    # A short decode of T=8 teacher-forced tokens, initHidden()-style zero hidden.
    T = 8
    tokens = jax.random.randint(jax.random.PRNGKey(1), (T,), 0, VOCAB, dtype=jnp.int32)
    hidden0 = jnp.zeros((1, 1, HIDDEN), dtype=jnp.float32)

    # Fused multi-step decode (single pallas_call, single grid step).
    logp_seq, h_final = decoder_decode(tokens, hidden0, prep)
    logp_seq = jax.block_until_ready(logp_seq)
    h_final = jax.block_until_ready(h_final)

    logp_ref, h_ref = decoder_decode_ref(tokens, hidden0, params)
    assert logp_seq.shape == (T, VOCAB) and h_final.shape == (1, 1, HIDDEN)
    np.testing.assert_allclose(np.asarray(logp_seq), np.asarray(logp_ref),
                               rtol=2e-5, atol=2e-5)
    np.testing.assert_allclose(np.asarray(h_final), np.asarray(h_ref),
                               rtol=2e-5, atol=2e-5)

    # Single-step form (exact module signature: forward(input, hidden)).
    tok1 = jnp.array([3], dtype=jnp.int32)
    logp1, h1 = decoder_forward(tok1, hidden0, prep)
    logp1 = jax.block_until_ready(logp1)
    logp1_ref, h1_ref = decoder_forward_ref(3, hidden0, params)
    np.testing.assert_allclose(np.asarray(logp1), np.asarray(logp1_ref),
                               rtol=2e-5, atol=2e-5)
    np.testing.assert_allclose(np.asarray(h1), np.asarray(h1_ref),
                               rtol=2e-5, atol=2e-5)

    print("KERNEL_OK")
</pallas_src>

<mosaic_0001>
module attributes {stable_mosaic.version = 11 : i64} {
  func.func @decoder_kernel(%arg0: i32, %arg1: memref<8xi32, #tpu.memory_space<smem>>, %arg2: memref<64x32xf32, #tpu.memory_space<vmem>>, %arg3: memref<32x96xf32, #tpu.memory_space<vmem>>, %arg4: memref<32x96xf32, #tpu.memory_space<vmem>>, %arg5: memref<1x96xf32, #tpu.memory_space<vmem>>, %arg6: memref<1x96xf32, #tpu.memory_space<vmem>>, %arg7: memref<32x64xf32, #tpu.memory_space<vmem>>, %arg8: memref<1x64xf32, #tpu.memory_space<vmem>>, %arg9: memref<1x32xf32, #tpu.memory_space<vmem>>, %arg10: memref<8x64xf32, #tpu.memory_space<vmem>>, %arg11: memref<1x32xf32, #tpu.memory_space<vmem>>, %arg12: memref<8x32xf32, #tpu.memory_space<vmem>>, %arg13: memref<8x96xf32, #tpu.memory_space<vmem>>, %arg14: memref<8x32xf32, #tpu.memory_space<vmem>>) attributes {dimension_semantics = [#tpu.dimension_semantics<arbitrary>], iteration_bounds = array<i64: 1>, scalar_prefetch = 1 : i64, scratch_operands = 3 : i64, tpu.core_type = #tpu.core_type<tc>, window_params = [{pipeline_mode = #tpu.pipeline_mode<synchronous>, transform_indices = @transform_0, window_bounds = array<i64: 64, 32>}, {pipeline_mode = #tpu.pipeline_mode<synchronous>, transform_indices = @transform_1, window_bounds = array<i64: 32, 96>}, {pipeline_mode = #tpu.pipeline_mode<synchronous>, transform_indices = @transform_2, window_bounds = array<i64: 32, 96>}, {pipeline_mode = #tpu.pipeline_mode<synchronous>, transform_indices = @transform_3, window_bounds = array<i64: 1, 96>}, {pipeline_mode = #tpu.pipeline_mode<synchronous>, transform_indices = @transform_4, window_bounds = array<i64: 1, 96>}, {pipeline_mode = #tpu.pipeline_mode<synchronous>, transform_indices = @transform_5, window_bounds = array<i64: 32, 64>}, {pipeline_mode = #tpu.pipeline_mode<synchronous>, transform_indices = @transform_6, window_bounds = array<i64: 1, 64>}, {pipeline_mode = #tpu.pipeline_mode<synchronous>, transform_indices = @transform_7, window_bounds = array<i64: 1, 32>}, {pipeline_mode = #tpu.pipeline_mode<synchronous>, transform_indices = @transform_8, window_bounds = array<i64: 8, 64>}, {pipeline_mode = #tpu.pipeline_mode<synchronous>, transform_indices = @transform_9, window_bounds = array<i64: 1, 32>}]} {
    %c0_i32 = arith.constant 0 : i32
    %0 = arith.index_cast %c0_i32 : i32 to index
    %1 = memref.load %arg1[%0] : memref<8xi32, #tpu.memory_space<smem>>
    %c0_i32_0 = arith.constant 0 : i32
    %c63_i32 = arith.constant 63 : i32
    %2 = arith.maxsi %c0_i32_0, %1 : i32
    %3 = arith.minsi %c63_i32, %2 : i32
    %4 = arith.index_cast %3 : i32 to index
    %c0 = arith.constant 0 : index
    %5 = vector.load %arg2[%4, %c0] : memref<64x32xf32, #tpu.memory_space<vmem>>, vector<1x32xf32>
    %cst = arith.constant 0.000000e+00 : f32
    %6 = vector.broadcast %cst : f32 to vector<1x32xf32>
    %7 = arith.maximumf %5, %6 : vector<1x32xf32>
    %8 = arith.index_cast %c0_i32 : i32 to index
    %c0_1 = arith.constant 0 : index
    %9 = vector.load %arg12[%8, %c0_1] : memref<8x32xf32, #tpu.memory_space<vmem>>, vector<1x32xf32>
    tpu.vector_store %arg12[%8, %c0_1], %7 {strides = array<i32>} : memref<8x32xf32, #tpu.memory_space<vmem>>, vector<1x32xf32>,
    %c1_i32 = arith.constant 1 : i32
    %10 = arith.index_cast %c1_i32 : i32 to index
    %11 = memref.load %arg1[%10] : memref<8xi32, #tpu.memory_space<smem>>
    %c0_i32_2 = arith.constant 0 : i32
    %c63_i32_3 = arith.constant 63 : i32
    %12 = arith.maxsi %c0_i32_2, %11 : i32
    %13 = arith.minsi %c63_i32_3, %12 : i32
    %14 = arith.index_cast %13 : i32 to index
    %c0_4 = arith.constant 0 : index
    %15 = vector.load %arg2[%14, %c0_4] : memref<64x32xf32, #tpu.memory_space<vmem>>, vector<1x32xf32>
    %cst_5 = arith.constant 0.000000e+00 : f32
    %16 = vector.broadcast %cst_5 : f32 to vector<1x32xf32>
    %17 = arith.maximumf %15, %16 : vector<1x32xf32>
    %18 = arith.index_cast %c1_i32 : i32 to index
    %c0_6 = arith.constant 0 : index
    %19 = vector.load %arg12[%18, %c0_6] : memref<8x32xf32, #tpu.memory_space<vmem>>, vector<1x32xf32>
    tpu.vector_store %arg12[%18, %c0_6], %17 {strides = array<i32>} : memref<8x32xf32, #tpu.memory_space<vmem>>, vector<1x32xf32>,
    %c2_i32 = arith.constant 2 : i32
    %20 = arith.index_cast %c2_i32 : i32 to index
    %21 = memref.load %arg1[%20] : memref<8xi32, #tpu.memory_space<smem>>
    %c0_i32_7 = arith.constant 0 : i32
    %c63_i32_8 = arith.constant 63 : i32
    %22 = arith.maxsi %c0_i32_7, %21 : i32
    %23 = arith.minsi %c63_i32_8, %22 : i32
    %24 = arith.index_cast %23 : i32 to index
    %c0_9 = arith.constant 0 : index
    %25 = vector.load %arg2[%24, %c0_9] : memref<64x32xf32, #tpu.memory_space<vmem>>, vector<1x32xf32>
    %cst_10 = arith.constant 0.000000e+00 : f32
    %26 = vector.broadcast %cst_10 : f32 to vector<1x32xf32>
    %27 = arith.maximumf %25, %26 : vector<1x32xf32>
    %28 = arith.index_cast %c2_i32 : i32 to index
    %c0_11 = arith.constant 0 : index
    %29 = vector.load %arg12[%28, %c0_11] : memref<8x32xf32, #tpu.memory_space<vmem>>, vector<1x32xf32>
    tpu.vector_store %arg12[%28, %c0_11], %27 {strides = array<i32>} : memref<8x32xf32, #tpu.memory_space<vmem>>, vector<1x32xf32>,
    %c3_i32 = arith.constant 3 : i32
    %30 = arith.index_cast %c3_i32 : i32 to index
    %31 = memref.load %arg1[%30] : memref<8xi32, #tpu.memory_space<smem>>
    %c0_i32_12 = arith.constant 0 : i32
    %c63_i32_13 = arith.constant 63 : i32
    %32 = arith.maxsi %c0_i32_12, %31 : i32
    %33 = arith.minsi %c63_i32_13, %32 : i32
    %34 = arith.index_cast %33 : i32 to index
    %c0_14 = arith.constant 0 : index
    %35 = vector.load %arg2[%34, %c0_14] : memref<64x32xf32, #tpu.memory_space<vmem>>, vector<1x32xf32>
    %cst_15 = arith.constant 0.000000e+00 : f32
    %36 = vector.broadcast %cst_15 : f32 to vector<1x32xf32>
    %37 = arith.maximumf %35, %36 : vector<1x32xf32>
    %38 = arith.index_cast %c3_i32 : i32 to index
    %c0_16 = arith.constant 0 : index
    %39 = vector.load %arg12[%38, %c0_16] : memref<8x32xf32, #tpu.memory_space<vmem>>, vector<1x32xf32>
    tpu.vector_store %arg12[%38, %c0_16], %37 {strides = array<i32>} : memref<8x32xf32, #tpu.memory_space<vmem>>, vector<1x32xf32>,
    %c4_i32 = arith.constant 4 : i32
    %40 = arith.index_cast %c4_i32 : i32 to index
    %41 = memref.load %arg1[%40] : memref<8xi32, #tpu.memory_space<smem>>
    %c0_i32_17 = arith.constant 0 : i32
    %c63_i32_18 = arith.constant 63 : i32
    %42 = arith.maxsi %c0_i32_17, %41 : i32
    %43 = arith.minsi %c63_i32_18, %42 : i32
    %44 = arith.index_cast %43 : i32 to index
    %c0_19 = arith.constant 0 : index
    %45 = vector.load %arg2[%44, %c0_19] : memref<64x32xf32, #tpu.memory_space<vmem>>, vector<1x32xf32>
    %cst_20 = arith.constant 0.000000e+00 : f32
    %46 = vector.broadcast %cst_20 : f32 to vector<1x32xf32>
    %47 = arith.maximumf %45, %46 : vector<1x32xf32>
    %48 = arith.index_cast %c4_i32 : i32 to index
    %c0_21 = arith.constant 0 : index
    %49 = vector.load %arg12[%48, %c0_21] : memref<8x32xf32, #tpu.memory_space<vmem>>, vector<1x32xf32>
    tpu.vector_store %arg12[%48, %c0_21], %47 {strides = array<i32>} : memref<8x32xf32, #tpu.memory_space<vmem>>, vector<1x32xf32>,
    %c5_i32 = arith.constant 5 : i32
    %50 = arith.index_cast %c5_i32 : i32 to index
    %51 = memref.load %arg1[%50] : memref<8xi32, #tpu.memory_space<smem>>
    %c0_i32_22 = arith.constant 0 : i32
    %c63_i32_23 = arith.constant 63 : i32
    %52 = arith.maxsi %c0_i32_22, %51 : i32
    %53 = arith.minsi %c63_i32_23, %52 : i32
    %54 = arith.index_cast %53 : i32 to index
    %c0_24 = arith.constant 0 : index
    %55 = vector.load %arg2[%54, %c0_24] : memref<64x32xf32, #tpu.memory_space<vmem>>, vector<1x32xf32>
    %cst_25 = arith.constant 0.000000e+00 : f32
    %56 = vector.broadcast %cst_25 : f32 to vector<1x32xf32>
    %57 = arith.maximumf %55, %56 : vector<1x32xf32>
    %58 = arith.index_cast %c5_i32 : i32 to index
    %c0_26 = arith.constant 0 : index
    %59 = vector.load %arg12[%58, %c0_26] : memref<8x32xf32, #tpu.memory_space<vmem>>, vector<1x32xf32>
    tpu.vector_store %arg12[%58, %c0_26], %57 {strides = array<i32>} : memref<8x32xf32, #tpu.memory_space<vmem>>, vector<1x32xf32>,
    %c6_i32 = arith.constant 6 : i32
    %60 = arith.index_cast %c6_i32 : i32 to index
    %61 = memref.load %arg1[%60] : memref<8xi32, #tpu.memory_space<smem>>
    %c0_i32_27 = arith.constant 0 : i32
    %c63_i32_28 = arith.constant 63 : i32
    %62 = arith.maxsi %c0_i32_27, %61 : i32
    %63 = arith.minsi %c63_i32_28, %62 : i32
    %64 = arith.index_cast %63 : i32 to index
    %c0_29 = arith.constant 0 : index
    %65 = vector.load %arg2[%64, %c0_29] : memref<64x32xf32, #tpu.memory_space<vmem>>, vector<1x32xf32>
    %cst_30 = arith.constant 0.000000e+00 : f32
    %66 = vector.broadcast %cst_30 : f32 to vector<1x32xf32>
    %67 = arith.maximumf %65, %66 : vector<1x32xf32>
    %68 = arith.index_cast %c6_i32 : i32 to index
    %c0_31 = arith.constant 0 : index
    %69 = vector.load %arg12[%68, %c0_31] : memref<8x32xf32, #tpu.memory_space<vmem>>, vector<1x32xf32>
    tpu.vector_store %arg12[%68, %c0_31], %67 {strides = array<i32>} : memref<8x32xf32, #tpu.memory_space<vmem>>, vector<1x32xf32>,
    %c7_i32 = arith.constant 7 : i32
    %70 = arith.index_cast %c7_i32 : i32 to index
    %71 = memref.load %arg1[%70] : memref<8xi32, #tpu.memory_space<smem>>
    %c0_i32_32 = arith.constant 0 : i32
    %c63_i32_33 = arith.constant 63 : i32
    %72 = arith.maxsi %c0_i32_32, %71 : i32
    %73 = arith.minsi %c63_i32_33, %72 : i32
    %74 = arith.index_cast %73 : i32 to index
    %c0_34 = arith.constant 0 : index
    %75 = vector.load %arg2[%74, %c0_34] : memref<64x32xf32, #tpu.memory_space<vmem>>, vector<1x32xf32>
    %cst_35 = arith.constant 0.000000e+00 : f32
    %76 = vector.broadcast %cst_35 : f32 to vector<1x32xf32>
    %77 = arith.maximumf %75, %76 : vector<1x32xf32>
    %78 = arith.index_cast %c7_i32 : i32 to index
    %c0_36 = arith.constant 0 : index
    %79 = vector.load %arg12[%78, %c0_36] : memref<8x32xf32, #tpu.memory_space<vmem>>, vector<1x32xf32>
    tpu.vector_store %arg12[%78, %c0_36], %77 {strides = array<i32>} : memref<8x32xf32, #tpu.memory_space<vmem>>, vector<1x32xf32>,
    %c8_i32 = arith.constant 8 : i32
    %c0_37 = arith.constant 0 : index
    %c0_38 = arith.constant 0 : index
    %80 = vector.load %arg12[%c0_37, %c0_38] : memref<8x32xf32, #tpu.memory_space<vmem>>, vector<8x32xf32>
    %c0_39 = arith.constant 0 : index
    %c0_40 = arith.constant 0 : index
    %81 = vector.load %arg3[%c0_39, %c0_40] : memref<32x96xf32, #tpu.memory_space<vmem>>, vector<32x96xf32>
    %cst_41 = arith.constant dense<0.000000e+00> : vector<8x96xf32>
    %82 = tpu.matmul %80, %81, %cst_41 {dimension_numbers = #tpu.dot_dimension_numbers<[1], [0], [0], [1], [0, 0, 1, 1], [], []>} : vector<8x32xf32>, vector<32x96xf32>, vector<8x96xf32> -> vector<8x96xf32>
    %c0_42 = arith.constant 0 : index
    %c0_43 = arith.constant 0 : index
    %83 = vector.load %arg5[%c0_42, %c0_43] : memref<1x96xf32, #tpu.memory_space<vmem>>, vector<1x96xf32>
    %84 = vector.broadcast %83 : vector<1x96xf32> to vector<8x96xf32>
    %85 = arith.addf %82, %84 : vector<8x96xf32>
    %c0_44 = arith.constant 0 : index
    %c0_45 = arith.constant 0 : index
    %86 = vector.load %arg13[%c0_44, %c0_45] : memref<8x96xf32, #tpu.memory_space<vmem>>, vector<8x96xf32>
    tpu.vector_store %arg13[%c0_44, %c0_45], %85 {strides = array<i32>} : memref<8x96xf32, #tpu.memory_space<vmem>>, vector<8x96xf32>,
    %c0_46 = arith.constant 0 : index
    %c0_47 = arith.constant 0 : index
    %87 = vector.load %arg9[%c0_46, %c0_47] : memref<1x32xf32, #tpu.memory_space<vmem>>, vector<1x32xf32>
    %c0_i32_48 = arith.constant 0 : i32
    %c0_49 = arith.constant 0 : index
    %c0_50 = arith.constant 0 : index
    %88 = vector.load %arg4[%c0_49, %c0_50] : memref<32x96xf32, #tpu.memory_space<vmem>>, vector<32x96xf32>
    %cst_51 = arith.constant dense<0.000000e+00> : vector<1x96xf32>
    %89 = tpu.matmul %87, %88, %cst_51 {dimension_numbers = #tpu.dot_dimension_numbers<[1], [0], [0], [1], [0, 0, 1, 1], [], []>} : vector<1x32xf32>, vector<32x96xf32>, vector<1x96xf32> -> vector<1x96xf32>
    %c0_52 = arith.constant 0 : index
    %c0_53 = arith.constant 0 : index
    %90 = vector.load %arg6[%c0_52, %c0_53] : memref<1x96xf32, #tpu.memory_space<vmem>>, vector<1x96xf32>
    %91 = arith.addf %89, %90 : vector<1x96xf32>
    %92 = arith.index_cast %c0_i32_48 : i32 to index
    %c0_54 = arith.constant 0 : index
    %93 = vector.load %arg13[%92, %c0_54] : memref<8x96xf32, #tpu.memory_space<vmem>>, vector<1x96xf32>
    %94 = vector.extract_strided_slice %93 {offsets = [0, 0], sizes = [1, 32], strides = [1, 1]} : vector<1x96xf32> to vector<1x32xf32>
    %95 = vector.extract_strided_slice %91 {offsets = [0, 0], sizes = [1, 32], strides = [1, 1]} : vector<1x96xf32> to vector<1x32xf32>
    %96 = arith.addf %94, %95 : vector<1x32xf32>
    %97 = arith.negf %96 : vector<1x32xf32>
    %98 = math.exp %97 : vector<1x32xf32>
    %cst_55 = arith.constant 1.000000e+00 : f32
    %99 = vector.broadcast %cst_55 : f32 to vector<1x32xf32>
    %100 = arith.addf %99, %98 : vector<1x32xf32>
    %101 = arith.divf %99, %100 : vector<1x32xf32>
    %102 = vector.extract_strided_slice %93 {offsets = [0, 32], sizes = [1, 32], strides = [1, 1]} : vector<1x96xf32> to vector<1x32xf32>
    %103 = vector.extract_strided_slice %91 {offsets = [0, 32], sizes = [1, 32], strides = [1, 1]} : vector<1x96xf32> to vector<1x32xf32>
    %104 = arith.addf %102, %103 : vector<1x32xf32>
    %105 = arith.negf %104 : vector<1x32xf32>
    %106 = math.exp %105 : vector<1x32xf32>
    %cst_56 = arith.constant 1.000000e+00 : f32
    %107 = vector.broadcast %cst_56 : f32 to vector<1x32xf32>
    %108 = arith.addf %107, %106 : vector<1x32xf32>
    %109 = arith.divf %107, %108 : vector<1x32xf32>
    %110 = vector.extract_strided_slice %93 {offsets = [0, 64], sizes = [1, 32], strides = [1, 1]} : vector<1x96xf32> to vector<1x32xf32>
    %111 = vector.extract_strided_slice %91 {offsets = [0, 64], sizes = [1, 32], strides = [1, 1]} : vector<1x96xf32> to vector<1x32xf32>
    %112 = arith.mulf %101, %111 : vector<1x32xf32>
    %113 = arith.addf %110, %112 : vector<1x32xf32>
    %114 = math.tanh %113 : vector<1x32xf32>
    %cst_57 = arith.constant 1.000000e+00 : f32
    %115 = vector.broadcast %cst_57 : f32 to vector<1x32xf32>
    %116 = arith.subf %115, %109 : vector<1x32xf32>
    %117 = arith.mulf %116, %114 : vector<1x32xf32>
    %118 = arith.mulf %109, %87 : vector<1x32xf32>
    %119 = arith.addf %117, %118 : vector<1x32xf32>
    %120 = arith.index_cast %c0_i32_48 : i32 to index
    %c0_58 = arith.constant 0 : index
    %121 = vector.load %arg14[%120, %c0_58] : memref<8x32xf32, #tpu.memory_space<vmem>>, vector<1x32xf32>
    tpu.vector_store %arg14[%120, %c0_58], %119 {strides = array<i32>} : memref<8x32xf32, #tpu.memory_space<vmem>>, vector<1x32xf32>,
    %c1_i32_59 = arith.constant 1 : i32
    %c0_60 = arith.constant 0 : index
    %c0_61 = arith.constant 0 : index
    %122 = vector.load %arg4[%c0_60, %c0_61] : memref<32x96xf32, #tpu.memory_space<vmem>>, vector<32x96xf32>
    %cst_62 = arith.constant dense<0.000000e+00> : vector<1x96xf32>
    %123 = tpu.matmul %119, %122, %cst_62 {dimension_numbers = #tpu.dot_dimension_numbers<[1], [0], [0], [1], [0, 0, 1, 1], [], []>} : vector<1x32xf32>, vector<32x96xf32>, vector<1x96xf32> -> vector<1x96xf32>
    %c0_63 = arith.constant 0 : index
    %c0_64 = arith.constant 0 : index
    %124 = vector.load %arg6[%c0_63, %c0_64] : memref<1x96xf32, #tpu.memory_space<vmem>>, vector<1x96xf32>
    %125 = arith.addf %123, %124 : vector<1x96xf32>
    %126 = arith.index_cast %c1_i32_59 : i32 to index
    %c0_65 = arith.constant 0 : index
    %127 = vector.load %arg13[%126, %c0_65] : memref<8x96xf32, #tpu.memory_space<vmem>>, vector<1x96xf32>
    %128 = vector.extract_strided_slice %127 {offsets = [0, 0], sizes = [1, 32], strides = [1, 1]} : vector<1x96xf32> to vector<1x32xf32>
    %129 = vector.extract_strided_slice %125 {offsets = [0, 0], sizes = [1, 32], strides = [1, 1]} : vector<1x96xf32> to vector<1x32xf32>
    %130 = arith.addf %128, %129 : vector<1x32xf32>
    %131 = arith.negf %130 : vector<1x32xf32>
    %132 = math.exp %131 : vector<1x32xf32>
    %cst_66 = arith.constant 1.000000e+00 : f32
    %133 = vector.broadcast %cst_66 : f32 to vector<1x32xf32>
    %134 = arith.addf %133, %132 : vector<1x32xf32>
    %135 = arith.divf %133, %134 : vector<1x32xf32>
    %136 = vector.extract_strided_slice %127 {offsets = [0, 32], sizes = [1, 32], strides = [1, 1]} : vector<1x96xf32> to vector<1x32xf32>
    %137 = vector.extract_strided_slice %125 {offsets = [0, 32], sizes = [1, 32], strides = [1, 1]} : vector<1x96xf32> to vector<1x32xf32>
    %138 = arith.addf %136, %137 : vector<1x32xf32>
    %139 = arith.negf %138 : vector<1x32xf32>
    %140 = math.exp %139 : vector<1x32xf32>
    %cst_67 = arith.constant 1.000000e+00 : f32
    %141 = vector.broadcast %cst_67 : f32 to vector<1x32xf32>
    %142 = arith.addf %141, %140 : vector<1x32xf32>
    %143 = arith.divf %141, %142 : vector<1x32xf32>
    %144 = vector.extract_strided_slice %127 {offsets = [0, 64], sizes = [1, 32], strides = [1, 1]} : vector<1x96xf32> to vector<1x32xf32>
    %145 = vector.extract_strided_slice %125 {offsets = [0, 64], sizes = [1, 32], strides = [1, 1]} : vector<1x96xf32> to vector<1x32xf32>
    %146 = arith.mulf %135, %145 : vector<1x32xf32>
    %147 = arith.addf %144, %146 : vector<1x32xf32>
    %148 = math.tanh %147 : vector<1x32xf32>
    %cst_68 = arith.constant 1.000000e+00 : f32
    %149 = vector.broadcast %cst_68 : f32 to vector<1x32xf32>
    %150 = arith.subf %149, %143 : vector<1x32xf32>
    %151 = arith.mulf %150, %148 : vector<1x32xf32>
    %152 = arith.mulf %143, %119 : vector<1x32xf32>
    %153 = arith.addf %151, %152 : vector<1x32xf32>
    %154 = arith.index_cast %c1_i32_59 : i32 to index
    %c0_69 = arith.constant 0 : index
    %155 = vector.load %arg14[%154, %c0_69] : memref<8x32xf32, #tpu.memory_space<vmem>>, vector<1x32xf32>
    tpu.vector_store %arg14[%154, %c0_69], %153 {strides = array<i32>} : memref<8x32xf32, #tpu.memory_space<vmem>>, vector<1x32xf32>,
    %c2_i32_70 = arith.constant 2 : i32
    %c0_71 = arith.constant 0 : index
    %c0_72 = arith.constant 0 : index
    %156 = vector.load %arg4[%c0_71, %c0_72] : memref<32x96xf32, #tpu.memory_space<vmem>>, vector<32x96xf32>
    %cst_73 = arith.constant dense<0.000000e+00> : vector<1x96xf32>
    %157 = tpu.matmul %153, %156, %cst_73 {dimension_numbers = #tpu.dot_dimension_numbers<[1], [0], [0], [1], [0, 0, 1, 1], [], []>} : vector<1x32xf32>, vector<32x96xf32>, vector<1x96xf32> -> vector<1x96xf32>
    %c0_74 = arith.constant 0 : index
    %c0_75 = arith.constant 0 : index
    %158 = vector.load %arg6[%c0_74, %c0_75] : memref<1x96xf32, #tpu.memory_space<vmem>>, vector<1x96xf32>
    %159 = arith.addf %157, %158 : vector<1x96xf32>
    %160 = arith.index_cast %c2_i32_70 : i32 to index
    %c0_76 = arith.constant 0 : index
    %161 = vector.load %arg13[%160, %c0_76] : memref<8x96xf32, #tpu.memory_space<vmem>>, vector<1x96xf32>
    %162 = vector.extract_strided_slice %161 {offsets = [0, 0], sizes = [1, 32], strides = [1, 1]} : vector<1x96xf32> to vector<1x32xf32>
    %163 = vector.extract_strided_slice %159 {offsets = [0, 0], sizes = [1, 32], strides = [1, 1]} : vector<1x96xf32> to vector<1x32xf32>
    %164 = arith.addf %162, %163 : vector<1x32xf32>
    %165 = arith.negf %164 : vector<1x32xf32>
    %166 = math.exp %165 : vector<1x32xf32>
    %cst_77 = arith.constant 1.000000e+00 : f32
    %167 = vector.broadcast %cst_77 : f32 to vector<1x32xf32>
    %168 = arith.addf %167, %166 : vector<1x32xf32>
    %169 = arith.divf %167, %168 : vector<1x32xf32>
    %170 = vector.extract_strided_slice %161 {offsets = [0, 32], sizes = [1, 32], strides = [1, 1]} : vector<1x96xf32> to vector<1x32xf32>
    %171 = vector.extract_strided_slice %159 {offsets = [0, 32], sizes = [1, 32], strides = [1, 1]} : vector<1x96xf32> to vector<1x32xf32>
    %172 = arith.addf %170, %171 : vector<1x32xf32>
    %173 = arith.negf %172 : vector<1x32xf32>
    %174 = math.exp %173 : vector<1x32xf32>
    %cst_78 = arith.constant 1.000000e+00 : f32
    %175 = vector.broadcast %cst_78 : f32 to vector<1x32xf32>
    %176 = arith.addf %175, %174 : vector<1x32xf32>
    %177 = arith.divf %175, %176 : vector<1x32xf32>
    %178 = vector.extract_strided_slice %161 {offsets = [0, 64], sizes = [1, 32], strides = [1, 1]} : vector<1x96xf32> to vector<1x32xf32>
    %179 = vector.extract_strided_slice %159 {offsets = [0, 64], sizes = [1, 32], strides = [1, 1]} : vector<1x96xf32> to vector<1x32xf32>
    %180 = arith.mulf %169, %179 : vector<1x32xf32>
    %181 = arith.addf %178, %180 : vector<1x32xf32>
    %182 = math.tanh %181 : vector<1x32xf32>
    %cst_79 = arith.constant 1.000000e+00 : f32
    %183 = vector.broadcast %cst_79 : f32 to vector<1x32xf32>
    %184 = arith.subf %183, %177 : vector<1x32xf32>
    %185 = arith.mulf %184, %182 : vector<1x32xf32>
    %186 = arith.mulf %177, %153 : vector<1x32xf32>
    %187 = arith.addf %185, %186 : vector<1x32xf32>
    %188 = arith.index_cast %c2_i32_70 : i32 to index
    %c0_80 = arith.constant 0 : index
    %189 = vector.load %arg14[%188, %c0_80] : memref<8x32xf32, #tpu.memory_space<vmem>>, vector<1x32xf32>
    tpu.vector_store %arg14[%188, %c0_80], %187 {strides = array<i32>} : memref<8x32xf32, #tpu.memory_space<vmem>>, vector<1x32xf32>,
    %c3_i32_81 = arith.constant 3 : i32
    %c0_82 = arith.constant 0 : index
    %c0_83 = arith.constant 0 : index
    %190 = vector.load %arg4[%c0_82, %c0_83] : memref<32x96xf32, #tpu.memory_space<vmem>>, vector<32x96xf32>
    %cst_84 = arith.constant dense<0.000000e+00> : vector<1x96xf32>
    %191 = tpu.matmul %187, %190, %cst_84 {dimension_numbers = #tpu.dot_dimension_numbers<[1], [0], [0], [1], [0, 0, 1, 1], [], []>} : vector<1x32xf32>, vector<32x96xf32>, vector<1x96xf32> -> vector<1x96xf32>
    %c0_85 = arith.constant 0 : index
    %c0_86 = arith.constant 0 : index
    %192 = vector.load %arg6[%c0_85, %c0_86] : memref<1x96xf32, #tpu.memory_space<vmem>>, vector<1x96xf32>
    %193 = arith.addf %191, %192 : vector<1x96xf32>
    %194 = arith.index_cast %c3_i32_81 : i32 to index
    %c0_87 = arith.constant 0 : index
    %195 = vector.load %arg13[%194, %c0_87] : memref<8x96xf32, #tpu.memory_space<vmem>>, vector<1x96xf32>
    %196 = vector.extract_strided_slice %195 {offsets = [0, 0], sizes = [1, 32], strides = [1, 1]} : vector<1x96xf32> to vector<1x32xf32>
    %197 = vector.extract_strided_slice %193 {offsets = [0, 0], sizes = [1, 32], strides = [1, 1]} : vector<1x96xf32> to vector<1x32xf32>
    %198 = arith.addf %196, %197 : vector<1x32xf32>
    %199 = arith.negf %198 : vector<1x32xf32>
    %200 = math.exp %199 : vector<1x32xf32>
    %cst_88 = arith.constant 1.000000e+00 : f32
    %201 = vector.broadcast %cst_88 : f32 to vector<1x32xf32>
    %202 = arith.addf %201, %200 : vector<1x32xf32>
    %203 = arith.divf %201, %202 : vector<1x32xf32>
    %204 = vector.extract_strided_slice %195 {offsets = [0, 32], sizes = [1, 32], strides = [1, 1]} : vector<1x96xf32> to vector<1x32xf32>
    %205 = vector.extract_strided_slice %193 {offsets = [0, 32], sizes = [1, 32], strides = [1, 1]} : vector<1x96xf32> to vector<1x32xf32>
    %206 = arith.addf %204, %205 : vector<1x32xf32>
    %207 = arith.negf %206 : vector<1x32xf32>
    %208 = math.exp %207 : vector<1x32xf32>
    %cst_89 = arith.constant 1.000000e+00 : f32
    %209 = vector.broadcast %cst_89 : f32 to vector<1x32xf32>
    %210 = arith.addf %209, %208 : vector<1x32xf32>
    %211 = arith.divf %209, %210 : vector<1x32xf32>
    %212 = vector.extract_strided_slice %195 {offsets = [0, 64], sizes = [1, 32], strides = [1, 1]} : vector<1x96xf32> to vector<1x32xf32>
    %213 = vector.extract_strided_slice %193 {offsets = [0, 64], sizes = [1, 32], strides = [1, 1]} : vector<1x96xf32> to vector<1x32xf32>
    %214 = arith.mulf %203, %213 : vector<1x32xf32>
    %215 = arith.addf %212, %214 : vector<1x32xf32>
    %216 = math.tanh %215 : vector<1x32xf32>
    %cst_90 = arith.constant 1.000000e+00 : f32
    %217 = vector.broadcast %cst_90 : f32 to vector<1x32xf32>
    %218 = arith.subf %217, %211 : vector<1x32xf32>
    %219 = arith.mulf %218, %216 : vector<1x32xf32>
    %220 = arith.mulf %211, %187 : vector<1x32xf32>
    %221 = arith.addf %219, %220 : vector<1x32xf32>
    %222 = arith.index_cast %c3_i32_81 : i32 to index
    %c0_91 = arith.constant 0 : index
    %223 = vector.load %arg14[%222, %c0_91] : memref<8x32xf32, #tpu.memory_space<vmem>>, vector<1x32xf32>
    tpu.vector_store %arg14[%222, %c0_91], %221 {strides = array<i32>} : memref<8x32xf32, #tpu.memory_space<vmem>>, vector<1x32xf32>,
    %c4_i32_92 = arith.constant 4 : i32
    %c0_93 = arith.constant 0 : index
    %c0_94 = arith.constant 0 : index
    %224 = vector.load %arg4[%c0_93, %c0_94] : memref<32x96xf32, #tpu.memory_space<vmem>>, vector<32x96xf32>
    %cst_95 = arith.constant dense<0.000000e+00> : vector<1x96xf32>
    %225 = tpu.matmul %221, %224, %cst_95 {dimension_numbers = #tpu.dot_dimension_numbers<[1], [0], [0], [1], [0, 0, 1, 1], [], []>} : vector<1x32xf32>, vector<32x96xf32>, vector<1x96xf32> -> vector<1x96xf32>
    %c0_96 = arith.constant 0 : index
    %c0_97 = arith.constant 0 : index
    %226 = vector.load %arg6[%c0_96, %c0_97] : memref<1x96xf32, #tpu.memory_space<vmem>>, vector<1x96xf32>
    %227 = arith.addf %225, %226 : vector<1x96xf32>
    %228 = arith.index_cast %c4_i32_92 : i32 to index
    %c0_98 = arith.constant 0 : index
    %229 = vector.load %arg13[%228, %c0_98] : memref<8x96xf32, #tpu.memory_space<vmem>>, vector<1x96xf32>
    %230 = vector.extract_strided_slice %229 {offsets = [0, 0], sizes = [1, 32], strides = [1, 1]} : vector<1x96xf32> to vector<1x32xf32>
    %231 = vector.extract_strided_slice %227 {offsets = [0, 0], sizes = [1, 32], strides = [1, 1]} : vector<1x96xf32> to vector<1x32xf32>
    %232 = arith.addf %230, %231 : vector<1x32xf32>
    %233 = arith.negf %232 : vector<1x32xf32>
    %234 = math.exp %233 : vector<1x32xf32>
    %cst_99 = arith.constant 1.000000e+00 : f32
    %235 = vector.broadcast %cst_99 : f32 to vector<1x32xf32>
    %236 = arith.addf %235, %234 : vector<1x32xf32>
    %237 = arith.divf %235, %236 : vector<1x32xf32>
    %238 = vector.extract_strided_slice %229 {offsets = [0, 32], sizes = [1, 32], strides = [1, 1]} : vector<1x96xf32> to vector<1x32xf32>
    %239 = vector.extract_strided_slice %227 {offsets = [0, 32], sizes = [1, 32], strides = [1, 1]} : vector<1x96xf32> to vector<1x32xf32>
    %240 = arith.addf %238, %239 : vector<1x32xf32>
    %241 = arith.negf %240 : vector<1x32xf32>
    %242 = math.exp %241 : vector<1x32xf32>
    %cst_100 = arith.constant 1.000000e+00 : f32
    %243 = vector.broadcast %cst_100 : f32 to vector<1x32xf32>
    %244 = arith.addf %243, %242 : vector<1x32xf32>
    %245 = arith.divf %243, %244 : vector<1x32xf32>
    %246 = vector.extract_strided_slice %229 {offsets = [0, 64], sizes = [1, 32], strides = [1, 1]} : vector<1x96xf32> to vector<1x32xf32>
    %247 = vector.extract_strided_slice %227 {offsets = [0, 64], sizes = [1, 32], strides = [1, 1]} : vector<1x96xf32> to vector<1x32xf32>
    %248 = arith.mulf %237, %247 : vector<1x32xf32>
    %249 = arith.addf %246, %248 : vector<1x32xf32>
    %250 = math.tanh %249 : vector<1x32xf32>
    %cst_101 = arith.constant 1.000000e+00 : f32
    %251 = vector.broadcast %cst_101 : f32 to vector<1x32xf32>
    %252 = arith.subf %251, %245 : vector<1x32xf32>
    %253 = arith.mulf %252, %250 : vector<1x32xf32>
    %254 = arith.mulf %245, %221 : vector<1x32xf32>
    %255 = arith.addf %253, %254 : vector<1x32xf32>
    %256 = arith.index_cast %c4_i32_92 : i32 to index
    %c0_102 = arith.constant 0 : index
    %257 = vector.load %arg14[%256, %c0_102] : memref<8x32xf32, #tpu.memory_space<vmem>>, vector<1x32xf32>
    tpu.vector_store %arg14[%256, %c0_102], %255 {strides = array<i32>} : memref<8x32xf32, #tpu.memory_space<vmem>>, vector<1x32xf32>,
    %c5_i32_103 = arith.constant 5 : i32
    %c0_104 = arith.constant 0 : index
    %c0_105 = arith.constant 0 : index
    %258 = vector.load %arg4[%c0_104, %c0_105] : memref<32x96xf32, #tpu.memory_space<vmem>>, vector<32x96xf32>
    %cst_106 = arith.constant dense<0.000000e+00> : vector<1x96xf32>
    %259 = tpu.matmul %255, %258, %cst_106 {dimension_numbers = #tpu.dot_dimension_numbers<[1], [0], [0], [1], [0, 0, 1, 1], [], []>} : vector<1x32xf32>, vector<32x96xf32>, vector<1x96xf32> -> vector<1x96xf32>
    %c0_107 = arith.constant 0 : index
    %c0_108 = arith.constant 0 : index
    %260 = vector.load %arg6[%c0_107, %c0_108] : memref<1x96xf32, #tpu.memory_space<vmem>>, vector<1x96xf32>
    %261 = arith.addf %259, %260 : vector<1x96xf32>
    %262 = arith.index_cast %c5_i32_103 : i32 to index
    %c0_109 = arith.constant 0 : index
    %263 = vector.load %arg13[%262, %c0_109] : memref<8x96xf32, #tpu.memory_space<vmem>>, vector<1x96xf32>
    %264 = vector.extract_strided_slice %263 {offsets = [0, 0], sizes = [1, 32], strides = [1, 1]} : vector<1x96xf32> to vector<1x32xf32>
    %265 = vector.extract_strided_slice %261 {offsets = [0, 0], sizes = [1, 32], strides = [1, 1]} : vector<1x96xf32> to vector<1x32xf32>
    %266 = arith.addf %264, %265 : vector<1x32xf32>
    %267 = arith.negf %266 : vector<1x32xf32>
    %268 = math.exp %267 : vector<1x32xf32>
    %cst_110 = arith.constant 1.000000e+00 : f32
    %269 = vector.broadcast %cst_110 : f32 to vector<1x32xf32>
    %270 = arith.addf %269, %268 : vector<1x32xf32>
    %271 = arith.divf %269, %270 : vector<1x32xf32>
    %272 = vector.extract_strided_slice %263 {offsets = [0, 32], sizes = [1, 32], strides = [1, 1]} : vector<1x96xf32> to vector<1x32xf32>
    %273 = vector.extract_strided_slice %261 {offsets = [0, 32], sizes = [1, 32], strides = [1, 1]} : vector<1x96xf32> to vector<1x32xf32>
    %274 = arith.addf %272, %273 : vector<1x32xf32>
    %275 = arith.negf %274 : vector<1x32xf32>
    %276 = math.exp %275 : vector<1x32xf32>
    %cst_111 = arith.constant 1.000000e+00 : f32
    %277 = vector.broadcast %cst_111 : f32 to vector<1x32xf32>
    %278 = arith.addf %277, %276 : vector<1x32xf32>
    %279 = arith.divf %277, %278 : vector<1x32xf32>
    %280 = vector.extract_strided_slice %263 {offsets = [0, 64], sizes = [1, 32], strides = [1, 1]} : vector<1x96xf32> to vector<1x32xf32>
    %281 = vector.extract_strided_slice %261 {offsets = [0, 64], sizes = [1, 32], strides = [1, 1]} : vector<1x96xf32> to vector<1x32xf32>
    %282 = arith.mulf %271, %281 : vector<1x32xf32>
    %283 = arith.addf %280, %282 : vector<1x32xf32>
    %284 = math.tanh %283 : vector<1x32xf32>
    %cst_112 = arith.constant 1.000000e+00 : f32
    %285 = vector.broadcast %cst_112 : f32 to vector<1x32xf32>
    %286 = arith.subf %285, %279 : vector<1x32xf32>
    %287 = arith.mulf %286, %284 : vector<1x32xf32>
    %288 = arith.mulf %279, %255 : vector<1x32xf32>
    %289 = arith.addf %287, %288 : vector<1x32xf32>
    %290 = arith.index_cast %c5_i32_103 : i32 to index
    %c0_113 = arith.constant 0 : index
    %291 = vector.load %arg14[%290, %c0_113] : memref<8x32xf32, #tpu.memory_space<vmem>>, vector<1x32xf32>
    tpu.vector_store %arg14[%290, %c0_113], %289 {strides = array<i32>} : memref<8x32xf32, #tpu.memory_space<vmem>>, vector<1x32xf32>,
    %c6_i32_114 = arith.constant 6 : i32
    %c0_115 = arith.constant 0 : index
    %c0_116 = arith.constant 0 : index
    %292 = vector.load %arg4[%c0_115, %c0_116] : memref<32x96xf32, #tpu.memory_space<vmem>>, vector<32x96xf32>
    %cst_117 = arith.constant dense<0.000000e+00> : vector<1x96xf32>
    %293 = tpu.matmul %289, %292, %cst_117 {dimension_numbers = #tpu.dot_dimension_numbers<[1], [0], [0], [1], [0, 0, 1, 1], [], []>} : vector<1x32xf32>, vector<32x96xf32>, vector<1x96xf32> -> vector<1x96xf32>
    %c0_118 = arith.constant 0 : index
    %c0_119 = arith.constant 0 : index
    %294 = vector.load %arg6[%c0_118, %c0_119] : memref<1x96xf32, #tpu.memory_space<vmem>>, vector<1x96xf32>
    %295 = arith.addf %293, %294 : vector<1x96xf32>
    %296 = arith.index_cast %c6_i32_114 : i32 to index
    %c0_120 = arith.constant 0 : index
    %297 = vector.load %arg13[%296, %c0_120] : memref<8x96xf32, #tpu.memory_space<vmem>>, vector<1x96xf32>
    %298 = vector.extract_strided_slice %297 {offsets = [0, 0], sizes = [1, 32], strides = [1, 1]} : vector<1x96xf32> to vector<1x32xf32>
    %299 = vector.extract_strided_slice %295 {offsets = [0, 0], sizes = [1, 32], strides = [1, 1]} : vector<1x96xf32> to vector<1x32xf32>
    %300 = arith.addf %298, %299 : vector<1x32xf32>
    %301 = arith.negf %300 : vector<1x32xf32>
    %302 = math.exp %301 : vector<1x32xf32>
    %cst_121 = arith.constant 1.000000e+00 : f32
    %303 = vector.broadcast %cst_121 : f32 to vector<1x32xf32>
    %304 = arith.addf %303, %302 : vector<1x32xf32>
    %305 = arith.divf %303, %304 : vector<1x32xf32>
    %306 = vector.extract_strided_slice %297 {offsets = [0, 32], sizes = [1, 32], strides = [1, 1]} : vector<1x96xf32> to vector<1x32xf32>
    %307 = vector.extract_strided_slice %295 {offsets = [0, 32], sizes = [1, 32], strides = [1, 1]} : vector<1x96xf32> to vector<1x32xf32>
    %308 = arith.addf %306, %307 : vector<1x32xf32>
    %309 = arith.negf %308 : vector<1x32xf32>
    %310 = math.exp %309 : vector<1x32xf32>
    %cst_122 = arith.constant 1.000000e+00 : f32
    %311 = vector.broadcast %cst_122 : f32 to vector<1x32xf32>
    %312 = arith.addf %311, %310 : vector<1x32xf32>
    %313 = arith.divf %311, %312 : vector<1x32xf32>
    %314 = vector.extract_strided_slice %297 {offsets = [0, 64], sizes = [1, 32], strides = [1, 1]} : vector<1x96xf32> to vector<1x32xf32>
    %315 = vector.extract_strided_slice %295 {offsets = [0, 64], sizes = [1, 32], strides = [1, 1]} : vector<1x96xf32> to vector<1x32xf32>
    %316 = arith.mulf %305, %315 : vector<1x32xf32>
    %317 = arith.addf %314, %316 : vector<1x32xf32>
    %318 = math.tanh %317 : vector<1x32xf32>
    %cst_123 = arith.constant 1.000000e+00 : f32
    %319 = vector.broadcast %cst_123 : f32 to vector<1x32xf32>
    %320 = arith.subf %319, %313 : vector<1x32xf32>
    %321 = arith.mulf %320, %318 : vector<1x32xf32>
    %322 = arith.mulf %313, %289 : vector<1x32xf32>
    %323 = arith.addf %321, %322 : vector<1x32xf32>
    %324 = arith.index_cast %c6_i32_114 : i32 to index
    %c0_124 = arith.constant 0 : index
    %325 = vector.load %arg14[%324, %c0_124] : memref<8x32xf32, #tpu.memory_space<vmem>>, vector<1x32xf32>
    tpu.vector_store %arg14[%324, %c0_124], %323 {strides = array<i32>} : memref<8x32xf32, #tpu.memory_space<vmem>>, vector<1x32xf32>,
    %c7_i32_125 = arith.constant 7 : i32
    %c0_126 = arith.constant 0 : index
    %c0_127 = arith.constant 0 : index
    %326 = vector.load %arg4[%c0_126, %c0_127] : memref<32x96xf32, #tpu.memory_space<vmem>>, vector<32x96xf32>
    %cst_128 = arith.constant dense<0.000000e+00> : vector<1x96xf32>
    %327 = tpu.matmul %323, %326, %cst_128 {dimension_numbers = #tpu.dot_dimension_numbers<[1], [0], [0], [1], [0, 0, 1, 1], [], []>} : vector<1x32xf32>, vector<32x96xf32>, vector<1x96xf32> -> vector<1x96xf32>
    %c0_129 = arith.constant 0 : index
    %c0_130 = arith.constant 0 : index
    %328 = vector.load %arg6[%c0_129, %c0_130] : memref<1x96xf32, #tpu.memory_space<vmem>>, vector<1x96xf32>
    %329 = arith.addf %327, %328 : vector<1x96xf32>
    %330 = arith.index_cast %c7_i32_125 : i32 to index
    %c0_131 = arith.constant 0 : index
    %331 = vector.load %arg13[%330, %c0_131] : memref<8x96xf32, #tpu.memory_space<vmem>>, vector<1x96xf32>
    %332 = vector.extract_strided_slice %331 {offsets = [0, 0], sizes = [1, 32], strides = [1, 1]} : vector<1x96xf32> to vector<1x32xf32>
    %333 = vector.extract_strided_slice %329 {offsets = [0, 0], sizes = [1, 32], strides = [1, 1]} : vector<1x96xf32> to vector<1x32xf32>
    %334 = arith.addf %332, %333 : vector<1x32xf32>
    %335 = arith.negf %334 : vector<1x32xf32>
    %336 = math.exp %335 : vector<1x32xf32>
    %cst_132 = arith.constant 1.000000e+00 : f32
    %337 = vector.broadcast %cst_132 : f32 to vector<1x32xf32>
    %338 = arith.addf %337, %336 : vector<1x32xf32>
    %339 = arith.divf %337, %338 : vector<1x32xf32>
    %340 = vector.extract_strided_slice %331 {offsets = [0, 32], sizes = [1, 32], strides = [1, 1]} : vector<1x96xf32> to vector<1x32xf32>
    %341 = vector.extract_strided_slice %329 {offsets = [0, 32], sizes = [1, 32], strides = [1, 1]} : vector<1x96xf32> to vector<1x32xf32>
    %342 = arith.addf %340, %341 : vector<1x32xf32>
    %343 = arith.negf %342 : vector<1x32xf32>
    %344 = math.exp %343 : vector<1x32xf32>
    %cst_133 = arith.constant 1.000000e+00 : f32
    %345 = vector.broadcast %cst_133 : f32 to vector<1x32xf32>
    %346 = arith.addf %345, %344 : vector<1x32xf32>
    %347 = arith.divf %345, %346 : vector<1x32xf32>
    %348 = vector.extract_strided_slice %331 {offsets = [0, 64], sizes = [1, 32], strides = [1, 1]} : vector<1x96xf32> to vector<1x32xf32>
    %349 = vector.extract_strided_slice %329 {offsets = [0, 64], sizes = [1, 32], strides = [1, 1]} : vector<1x96xf32> to vector<1x32xf32>
    %350 = arith.mulf %339, %349 : vector<1x32xf32>
    %351 = arith.addf %348, %350 : vector<1x32xf32>
    %352 = math.tanh %351 : vector<1x32xf32>
    %cst_134 = arith.constant 1.000000e+00 : f32
    %353 = vector.broadcast %cst_134 : f32 to vector<1x32xf32>
    %354 = arith.subf %353, %347 : vector<1x32xf32>
    %355 = arith.mulf %354, %352 : vector<1x32xf32>
    %356 = arith.mulf %347, %323 : vector<1x32xf32>
    %357 = arith.addf %355, %356 : vector<1x32xf32>
    %358 = arith.index_cast %c7_i32_125 : i32 to index
    %c0_135 = arith.constant 0 : index
    %359 = vector.load %arg14[%358, %c0_135] : memref<8x32xf32, #tpu.memory_space<vmem>>, vector<1x32xf32>
    tpu.vector_store %arg14[%358, %c0_135], %357 {strides = array<i32>} : memref<8x32xf32, #tpu.memory_space<vmem>>, vector<1x32xf32>,
    %c8_i32_136 = arith.constant 8 : i32
    %c0_137 = arith.constant 0 : index
    %c0_138 = arith.constant 0 : index
    %360 = vector.load %arg11[%c0_137, %c0_138] : memref<1x32xf32, #tpu.memory_space<vmem>>, vector<1x32xf32>
    tpu.vector_store %arg11[%c0_137, %c0_138], %357 {strides = array<i32>} : memref<1x32xf32, #tpu.memory_space<vmem>>, vector<1x32xf32>,
    %c0_139 = arith.constant 0 : index
    %c0_140 = arith.constant 0 : index
    %361 = vector.load %arg14[%c0_139, %c0_140] : memref<8x32xf32, #tpu.memory_space<vmem>>, vector<8x32xf32>
    %c0_141 = arith.constant 0 : index
    %c0_142 = arith.constant 0 : index
    %362 = vector.load %arg7[%c0_141, %c0_142] : memref<32x64xf32, #tpu.memory_space<vmem>>, vector<32x64xf32>
    %cst_143 = arith.constant dense<0.000000e+00> : vector<8x64xf32>
    %363 = tpu.matmul %361, %362, %cst_143 {dimension_numbers = #tpu.dot_dimension_numbers<[1], [0], [0], [1], [0, 0, 1, 1], [], []>} : vector<8x32xf32>, vector<32x64xf32>, vector<8x64xf32> -> vector<8x64xf32>
    %c0_144 = arith.constant 0 : index
    %c0_145 = arith.constant 0 : index
    %364 = vector.load %arg8[%c0_144, %c0_145] : memref<1x64xf32, #tpu.memory_space<vmem>>, vector<1x64xf32>
    %365 = vector.broadcast %364 : vector<1x64xf32> to vector<8x64xf32>
    %366 = arith.addf %363, %365 : vector<8x64xf32>
    %cst_146 = arith.constant dense<0xFF800000> : vector<8xf32>
    %367 = vector.multi_reduction <maximumf>, %366, %cst_146 [1] : vector<8x64xf32> to vector<8xf32>
    %368 = vector.shape_cast %367 : vector<8xf32> to vector<8x1xf32>
    %369 = vector.broadcast %368 : vector<8x1xf32> to vector<8x64xf32>
    %370 = arith.subf %366, %369 : vector<8x64xf32>
    %371 = math.exp %370 : vector<8x64xf32>
    %cst_147 = arith.constant dense<0.000000e+00> : vector<8xf32>
    %372 = vector.multi_reduction <add>, %371, %cst_147 [1] : vector<8x64xf32> to vector<8xf32>
    %373 = vector.shape_cast %372 : vector<8xf32> to vector<8x1xf32>
    %374 = math.log %373 : vector<8x1xf32>
    %375 = vector.broadcast %374 : vector<8x1xf32> to vector<8x64xf32>
    %376 = arith.subf %370, %375 : vector<8x64xf32>
    %c0_148 = arith.constant 0 : index
    %c0_149 = arith.constant 0 : index
    %377 = vector.load %arg10[%c0_148, %c0_149] : memref<8x64xf32, #tpu.memory_space<vmem>>, vector<8x64xf32>
    tpu.vector_store %arg10[%c0_148, %c0_149], %376 {strides = array<i32>} : memref<8x64xf32, #tpu.memory_space<vmem>>, vector<8x64xf32>,
    return
  }
  func.func @transform_0(%arg0: i32, %arg1: memref<8xi32, #tpu.memory_space<smem>>) -> (i32, i32) {
    %c0_i32 = arith.constant 0 : i32
    %c0_i32_0 = arith.constant 0 : i32
    %c0_i32_1 = arith.constant 0 : i32
    return %c0_i32, %c0_i32_0 : i32, i32
  }
  func.func @transform_1(%arg0: i32, %arg1: memref<8xi32, #tpu.memory_space<smem>>) -> (i32, i32) {
    %c0_i32 = arith.constant 0 : i32
    %c0_i32_0 = arith.constant 0 : i32
    %c0_i32_1 = arith.constant 0 : i32
    return %c0_i32, %c0_i32_0 : i32, i32
  }
  func.func @transform_2(%arg0: i32, %arg1: memref<8xi32, #tpu.memory_space<smem>>) -> (i32, i32) {
    %c0_i32 = arith.constant 0 : i32
    %c0_i32_0 = arith.constant 0 : i32
    %c0_i32_1 = arith.constant 0 : i32
    return %c0_i32, %c0_i32_0 : i32, i32
  }
  func.func @transform_3(%arg0: i32, %arg1: memref<8xi32, #tpu.memory_space<smem>>) -> (i32, i32) {
    %c0_i32 = arith.constant 0 : i32
    %c0_i32_0 = arith.constant 0 : i32
    %c0_i32_1 = arith.constant 0 : i32
    return %c0_i32, %c0_i32_0 : i32, i32
  }
  func.func @transform_4(%arg0: i32, %arg1: memref<8xi32, #tpu.memory_space<smem>>) -> (i32, i32) {
    %c0_i32 = arith.constant 0 : i32
    %c0_i32_0 = arith.constant 0 : i32
    %c0_i32_1 = arith.constant 0 : i32
    return %c0_i32, %c0_i32_0 : i32, i32
  }
  func.func @transform_5(%arg0: i32, %arg1: memref<8xi32, #tpu.memory_space<smem>>) -> (i32, i32) {
    %c0_i32 = arith.constant 0 : i32
    %c0_i32_0 = arith.constant 0 : i32
    %c0_i32_1 = arith.constant 0 : i32
    return %c0_i32, %c0_i32_0 : i32, i32
  }
  func.func @transform_6(%arg0: i32, %arg1: memref<8xi32, #tpu.memory_space<smem>>) -> (i32, i32) {
    %c0_i32 = arith.constant 0 : i32
    %c0_i32_0 = arith.constant 0 : i32
    %c0_i32_1 = arith.constant 0 : i32
    return %c0_i32, %c0_i32_0 : i32, i32
  }
  func.func @transform_7(%arg0: i32, %arg1: memref<8xi32, #tpu.memory_space<smem>>) -> (i32, i32) {
    %c0_i32 = arith.constant 0 : i32
    %c0_i32_0 = arith.constant 0 : i32
    %c0_i32_1 = arith.constant 0 : i32
    return %c0_i32, %c0_i32_0 : i32, i32
  }
  func.func @transform_8(%arg0: i32, %arg1: memref<8xi32, #tpu.memory_space<smem>>) -> (i32, i32) {
    %c0_i32 = arith.constant 0 : i32
    %c0_i32_0 = arith.constant 0 : i32
    %c0_i32_1 = arith.constant 0 : i32
    return %c0_i32, %c0_i32_0 : i32, i32
  }
  func.func @transform_9(%arg0: i32, %arg1: memref<8xi32, #tpu.memory_space<smem>>) -> (i32, i32) {
    %c0_i32 = arith.constant 0 : i32
    %c0_i32_0 = arith.constant 0 : i32
    %c0_i32_1 = arith.constant 0 : i32
    return %c0_i32, %c0_i32_0 : i32, i32
  }
}

</mosaic_0001>

<bundles_post_ra>
// kernel: tpu_custom_call.1
= control target key start
LH: loop header
LB: loop body
LE: loop exit
PB: predicated region body
PF: predicated region fallthrough
CT: control target
= control target key end

     0   :  { %s1999_s0 = inlined_call_operand.hbm [shape: s32[8], index: 0, kind: input, shape index: {}]   ;;  %s2000_s1 = inlined_call_operand.vmem [shape: f32[64,32], index: 1, kind: input, shape index: {}]   ;;  %s2001_s2 = inlined_call_operand.vmem [shape: f32[32,96], index: 2, kind: input, shape index: {}]   ;;  %s2002_s3 = inlined_call_operand.vmem [shape: f32[32,96], index: 3, kind: input, shape index: {}]   ;;  %s2003_s4 = inlined_call_operand.vmem [shape: f32[1,96], index: 4, kind: input, shape index: {}]   ;;  %s2004_s5 = inlined_call_operand.vmem [shape: f32[1,96], index: 5, kind: input, shape index: {}]   ;;  %s2005_s6 = inlined_call_operand.vmem [shape: f32[32,64], index: 6, kind: input, shape index: {}]   ;;  %s2006_s7 = inlined_call_operand.vmem [shape: f32[1,64], index: 7, kind: input, shape index: {}]   ;;  %s2007_s8 = inlined_call_operand.vmem [shape: f32[1,32], index: 8, kind: input, shape index: {}]   ;;  %s2008_s9 = inlined_call_operand.hbm [shape: f32[8,64], index: 9, kind: output, shape index: {0}]   ;;  %s2009_s10 = inlined_call_operand.hbm [shape: f32[1,32], index: 10, kind: output, shape index: {1}]  }
   0x1   :  { %s1580_s15 = scalar_lea.hbm %s1999_s0, 16 }
   0x2   :  { %p1581_p0 = scmp.ne.s32.totalorder %s1999_s0, %s1580_s15  ;;  %p1584_p1 = scmp.lt.u32.totalorder %s1580_s15, %s1999_s0 }
   0x4   :  { %p1586_p2 = pnand %p1584_p1, %p1581_p0 }
   0x6   :  { %1589 = shalt.err (!%p1586_p2)  }
   0x7   :  { %s1640_s20 = smov [#allocation6]  }
   0x8   :  { %17 = dma.hbm_to_smem %s1999_s0, 16, %s1640_s20, [#allocation5] }
   0x9   :  { %1634 = dma.done.wait [#allocation5], 16 }
   0xa   :  { %1635 = vsyncadd [#allocation5], 4294967280 }
   0xb   :  { %19 = sfence }
   0xc   :  { %20 = vsyncpa [#allocation8], 0  ;;  %v200_v0 = vld [vmem:[%s2002_s3] sm:$0xff]  ;;  %v201_v1 = vld [vmem:[%s2002_s3 + $0x8] sm:$0xff]  ;;  %v1641_v3 = vmov 0.0|0.0   ;;  %vm1642_vm0 = vmmov 0  }
   0xd   :  { %v202_v2 = vld [vmem:[%s2002_s3 + $0x10] sm:$0xff]  ;;  %1465 = vmatprep.subr.bf16.mxu1 %v1641_v3  ;;  %v1726_v4 = vpack.c.bf16 %v201_v1, %v200_v0  ;;  %v203_v5 = vld [vmem:[%s2002_s3 + $0x18] sm:$0xff]  ;;  %v1643_v6 = vmov 0.0   ;;  %v112_v7 = vld [vmem:[%s2001_s2] sm:$0xff]  ;;  %1459 = vmatprep.subr.bf16.mxu0 %v1641_v3  ;;  %s1748_s17 = sld [smem:[#allocation6]]  ;;  %s1753_s18 = sld [smem:[#allocation6 + $0x1]] }
   0xe   :  { %1368 = vmatprep.mubr.msk.f32.mxu1 %vm1642_vm0, %v1643_v6  ;;  %v113_v8 = vld [vmem:[%s2001_s2 + $0x8] sm:$0xff]  ;;  %v114_v9 = vld [vmem:[%s2001_s2 + $0x10] sm:$0xff]  ;;  %v115_v10 = vld [vmem:[%s2001_s2 + $0x18] sm:$0xff]  ;;  %1357 = vmatprep.mubr.msk.f32.mxu0 %vm1642_vm0, %v1643_v6  ;;  %v1751_v11 = vpack.c.bf16 %v203_v5, %v202_v2 }
   0xf   :  { %1467 = vmatpush3.bf16.msra.mxu1 %v1726_v4  ;;  %v1460_v12 = vpack.c.bf16 %v113_v8, %v112_v7 }
  0x10   :  { %1468 = vmatprep.subr.bf16.mxu1 %v1641_v3 }
  0x11   :  { %21 = vsyncpa [#allocation10], 0  ;;  %1461 = vmatpush3.bf16.msra.mxu0 %v1460_v12  ;;  %v1463_v13 = vpack.c.bf16 %v115_v10, %v114_v9  ;;  %s1756_s2 = sld [smem:[#allocation6 + $0x2]]  ;;  %s1758_s19 = sld [smem:[#allocation6 + $0x3]]  ;;  %vm123_vm1 = vcmask 261120   ;;  %vm46_vm2 = vcmask 253952   ;;  %v303_v50 = vlaneseq }
  0x12   :  { %1462 = vmatprep.subr.bf16.mxu0 %v1641_v3  ;;  %s1761_s20 = sld [smem:[#allocation6 + $0x4]]  ;;  %s1763_s21 = sld [smem:[#allocation6 + $0x5]]  ;;  %v1769_v14 = vld [vmem:[%s2007_s8] sm:$0x1]  ;;  %vm197_vm3 = vcmask 785408   ;;  %vm1166_vm4 = vcmask 523264  }
  0x13   :  { %1470 = vmatpush3.bf16.msra.mxu1 %v1751_v11  ;;  %s1771_s24 = sld [smem:[#allocation6 + $0x6]]  ;;  %s1773_s25 = sld [smem:[#allocation6 + $0x7]]  ;;  %v204_v32 = vld [vmem:[%s2004_s5] sm:$0x1]  ;;  %v304_v51 = vshrl.u32 %v303_v50, 7 }
  0x14   :  { %p39_p3 = scmp.gt.s32.totalorder %s1748_s17, 0  ;;  %p1216_p4 = scmp.lt.s32.totalorder %s1748_s17, 63  ;;  %1477 = vmatprep.subr.bf16.mxu1 %v1641_v3  ;;  %v1263_v36 = vld [vmem:[%s2003_s4] ss:$0 sm:$0xff] }
  0x15   :  { %1464 = vmatpush3.bf16.msra.mxu0 %v1463_v13  ;;  %p49_p5 = scmp.gt.s32.totalorder %s1753_s18, 0  ;;  %p1222_p6 = scmp.lt.s32.totalorder %s1753_s18, 63  ;;  %v305_v52 = vsub.s32 0, %v304_v51  ;;  %v321_v62 = vld [vmem:[%s2004_s5] sm:$0x1] }
  0x16   :  { %1369 = vmatmul.mubr.msk.f32.vlgmr.msra.gmra.mrb[0].mxu1 %vm123_vm1, %v1769_v14  ;;  %s2011_s17 = smov (!%p39_p3, %s1748_s17), 0  ;;  %1471 = vmatprep.subr.bf16.mxu0 %v1641_v3  ;;  %s1644_s28 = smov 64  }
  0x17   :  { %s2013_s18 = smov (!%p49_p5, %s1753_s18), 0  ;;  %1479 = vmatpush3.bf16.msra.mxu1 %v1726_v4  ;;  %1390 = vmatprep.mubr.msk.f32.mxu1 %vm1642_vm0, %v1643_v6  ;;  %s2015_s17 = smov (!%p1216_p4, %s2011_s17), 63  ;;  %v306_v54 = vrot.slane %v1769_v14, %v305_v52 }
  0x18   :  { %1480 = vmatprep.subr.bf16.mxu1 %v1641_v3  ;;  %s2017_s18 = smov (!%p1222_p6, %s2013_s18), 63  ;;  %s43_s27 = scalar_lea.vmem %s2000_s1, %s2015_s17 }
  0x19   :  { %p58_p7 = scmp.gt.s32.totalorder %s1756_s2, 0  ;;  %v44_v15 = vld [vmem:[%s43_s27] sm:$0x1]  ;;  %s53_s29 = scalar_lea.vmem %s2000_s1, %s2017_s18 }
  0x1a   :  { %p1228_p8 = scmp.lt.s32.totalorder %s1756_s2, 63  ;;  %v45_v16 = vmax.f32 %v44_v15, 0.0  ;;  %v54_v17 = vld [vmem:[%s53_s29] sm:$0x1]  ;;  %p67_p9 = scmp.gt.s32.totalorder %s1758_s19, 0 }
  0x1b   :  { %1482 = vmatpush3.bf16.msra.mxu1 %v1751_v11  ;;  %s2019_s2 = smov (!%p58_p7, %s1756_s2), 0  ;;  %v55_v18 = vmax.f32 %v54_v17, 0.0  ;;  %p1234_p10 = scmp.lt.s32.totalorder %s1758_s19, 63 }
  0x1c   :  { %1489 = vmatprep.subr.bf16.mxu1 %v1641_v3  ;;  %47 = vst.msk [vmem:[#allocation2] sm:$0x1] %vm46_vm2, %v45_v16  ;;  %s2021_s2 = smov (!%p1228_p8, %s2019_s2), 63  ;;  %s2023_s19 = smov (!%p67_p9, %s1758_s19), 0 }
  0x1d   :  { %56 = vst.msk [vmem:[#allocation2 + $0x1] sm:$0x1] %vm46_vm2, %v55_v18  ;;  %s62_s12 = scalar_lea.vmem %s2000_s1, %s2021_s2  ;;  %p76_p11 = scmp.gt.s32.totalorder %s1761_s20, 0 }
  0x1e   :  { %v63_v19 = vld [vmem:[%s62_s12] sm:$0x1]  ;;  %s2025_s19 = smov (!%p1234_p10, %s2023_s19), 63  ;;  %p1240_p12 = scmp.lt.s32.totalorder %s1761_s20, 63 }
  0x1f   :  { %v64_v20 = vmax.f32 %v63_v19, 0.0  ;;  %s77_s13 = scalar_select %p76_p11, %s1761_s20, 0 }
  0x20   :  { %s71_s3 = scalar_lea.vmem %s2000_s1, %s2025_s19  ;;  %p85_p13 = scmp.gt.s32.totalorder %s1763_s21, 0 }
  0x21   :  { %65 = vst.msk [vmem:[#allocation2 + $0x2] sm:$0x1] %vm46_vm2, %v64_v20  ;;  %v72_v21 = vld [vmem:[%s71_s3] sm:$0x1]  ;;  %p1246_p0 = scmp.lt.s32.totalorder %s1763_s21, 63  ;;  %s2027_s13 = smov (!%p1240_p12, %s77_s13), 63 }
  0x22   :  { %v73_v22 = vmax.f32 %v72_v21, 0.0  ;;  %s2029_s21 = smov (!%p85_p13, %s1763_s21), 0  ;;  %s80_s18 = scalar_lea.vmem %s2000_s1, %s2027_s13 }
  0x23   :  { %p94_p1 = scmp.gt.s32.totalorder %s1771_s24, 0  ;;  %v81_v23 = vld [vmem:[%s80_s18] sm:$0x1]  ;;  %s2031_s21 = smov (!%p1246_p0, %s2029_s21), 63 }
  0x24   :  { %74 = vst.msk [vmem:[#allocation2 + $0x3] sm:$0x1] %vm46_vm2, %v73_v22  ;;  %v82_v24 = vmax.f32 %v81_v23, 0.0  ;;  %s89_s22 = scalar_lea.vmem %s2000_s1, %s2031_s21  ;;  %p1252_p2 = scmp.lt.s32.totalorder %s1771_s24, 63  ;;  %v430_v23 = vld [vmem:[%s2004_s5] sm:$0x1] }
  0x25   :  { %s95_s2 = scalar_select %p94_p1, %s1771_s24, 0  ;;  %v90_v25 = vld [vmem:[%s89_s22] sm:$0x1] }
  0x26   :  { %83 = vst.msk [vmem:[#allocation2 + $0x4] sm:$0x1] %vm46_vm2, %v82_v24  ;;  %p103_p3 = scmp.gt.s32.totalorder %s1773_s25, 0  ;;  %p1258_p4 = scmp.lt.s32.totalorder %s1773_s25, 63  ;;  %v91_v26 = vmax.f32 %v90_v25, 0.0 }
  0x27   :  { %s2033_s2 = smov (!%p1252_p2, %s95_s2), 63  ;;  %s1645_s4 = smov 96  }
  0x28   :  { %s2035_s25 = smov (!%p103_p3, %s1773_s25), 0  ;;  %92 = vst.msk [vmem:[#allocation2 + $0x5] sm:$0x1] %vm46_vm2, %v91_v26  ;;  %s98_s26 = scalar_lea.vmem %s2000_s1, %s2033_s2 }
  0x29   :  { %v99_v27 = vld [vmem:[%s98_s26] sm:$0x1]  ;;  %s2037_s25 = smov (!%p1258_p4, %s2035_s25), 63  ;;  %s1646_s30 = smov 32  }
  0x2a   :  { %v100_v28 = vmax.f32 %v99_v27, 0.0  ;;  %s107_s24 = scalar_lea.vmem %s2000_s1, %s2037_s25  ;;  %s1647_s0 = smov [#allocation9]  }
  0x2b   :  { %v108_v29 = vld [vmem:[%s107_s24] sm:$0x1]  ;;  %s1196_s29 = sshll.u32 %s1647_s0, 4  ;;  %s1197_s29 = int_to_ptr.vmem [resolvable:$true] %s1196_s29 }
  0x2c   :  { %101 = vst.msk [vmem:[#allocation2 + $0x6] sm:$0x1] %vm46_vm2, %v100_v28  ;;  %v109_v30 = vmax.f32 %v108_v29, 0.0  ;;  %p1595_p6 = scmp.lt.s32.totalorder %s1197_s29, %s1197_s29 }
  0x2e   :  { %110 = vst.msk [vmem:[#allocation2 + $0x7] sm:$0x1] %vm46_vm2, %v109_v30 }
  0x35   :  { %v111_v31 = vld [vmem:[#allocation2] sm:$0xff] }
  0x36   :  { %1358 = vmatmul.mubr.msk.f32.vlgmr.msra.gmra.mrb[0].mxu0 %vm123_vm1, %v111_v31 }
  0x37   :  { %1473 = vmatpush3.bf16.msra.mxu0 %v1726_v4  ;;  %1379 = vmatprep.mubr.msk.f32.mxu0 %vm1642_vm0, %v1643_v6 }
  0x38   :  { %1474 = vmatprep.subr.bf16.mxu0 %v1641_v3 }
  0x3b   :  { %1476 = vmatpush3.bf16.msra.mxu0 %v1751_v11 }
  0x3c   :  { %1483 = vmatprep.subr.bf16.mxu0 %v1641_v3 }
  0xe9   :  { %v274_v33 = vpop.f32.mrb[0].mxu1 }
  0xea   :  { %v275_v34 = vadd.f32 %v274_v33, %v204_v32  ;;  %v1370_v35 = vpop.f32.mrb[1].mxu1 }
  0xec   :  { %287 = vrot.lane.b32.xlu0 %v275_v34, %s1644_s28 }
 0x109   :  { %v193_v37 = vpop.f32.mrb[0].mxu0 }
 0x10a   :  { %v194_v38 = vadd.f32 %v1263_v36, %v193_v37  ;;  %v1359_v39 = vpop.f32.mrb[1].mxu0 }
 0x10c   :  { %198 = vst.msk [vmem:[#allocation3] sm:$0xff] %vm197_vm3, %v194_v38 }
 0x113   :  { %v278_v40 = vld [vmem:[#allocation3] sm:$0x1]  ;;  %v394_v2 = vld [vmem:[#allocation3 + $0x1] sm:$0x1]  ;;  %v503_v27 = vld [vmem:[#allocation3 + $0x2] sm:$0x1] }
 0x114   :  { %v279_v41 = vadd.f32 %v278_v40, %v275_v34 }
 0x116   :  { %v1266_v42 = vmul.f32 -1.442695, %v279_v41 }
 0x118   :  { %1528 = vpow2.f32 %v1266_v42 }
 0x122   :  { %v1529_v43 = vpop.eup %1528 }
 0x123   :  { %v283_v44 = vadd.f32 1.0, %v1529_v43 }
 0x125   :  { %1530 = vrcp.f32 %v283_v44  ;;  %v539_v44 = vld [vmem:[%s2004_s5] sm:$0x1] }
 0x12f   :  { %v1531_v45 = vpop.eup %1530 }
 0x130   :  { %v297_v56 = vsub.f32 1.0, %v1531_v45 }
 0x15e   :  { %v288_v46 = vpop.permute.xlu0 %287 }
 0x15f   :  { %v290_v47 = vmul.f32 %v1531_v45, %v288_v46 }
 0x161   :  { %292 = vrot.lane.b32.xlu0 %v290_v47, %s1644_s28 }
 0x1d3   :  { %v293_v48 = vpop.permute.xlu0 %292 }
 0x1d4   :  { %v295_v49 = vadd.f32 %v293_v48, %v278_v40  ;;  %v612_v48 = vld [vmem:[#allocation3 + $0x3] sm:$0x1] }
 0x1d6   :  { %1532 = vtanh.f32 %v295_v49 }
 0x1e0   :  { %v1533_v53 = vpop.eup %1532 }
 0x1e1   :  { %299 = vrot.lane.b32.xlu1 %v1533_v53, %s1645_s4 }
 0x1e5   :  { %307 = vrot.lane.b32.xlu1 %v306_v54, %s1646_s30 }
 0x253   :  { %v300_v55 = vpop.permute.xlu1 %299 }
 0x254   :  { %v302_v58 = vmul.f32 %v300_v55, %v297_v56 }
 0x257   :  { %v308_v57 = vpop.permute.xlu1 %307 }
 0x258   :  { %v310_v59 = vmul.f32 %v1531_v45, %v308_v57 }
 0x25a   :  { %v311_v60 = vadd.f32 %v310_v59, %v302_v58 }
 0x25c   :  { %313 = vrot.lane.b32.xlu0 %v311_v60, %s1645_s4 }
 0x2ce   :  { %v314_v61 = vpop.permute.xlu0 %313 }
 0x2cf   :  { %316 = vst.msk [vmem:[#allocation4] sm:$0x1] %vm46_vm2, %v314_v61  ;;  %1380 = vmatmul.mubr.msk.f32.vlgmr.msra.gmra.mrb[2].mxu0 %vm123_vm1, %v314_v61 }
 0x2d0   :  { %1485 = vmatpush3.bf16.msra.mxu0 %v1726_v4  ;;  %1401 = vmatprep.mubr.msk.f32.mxu0 %vm1642_vm0, %v1643_v6 }
 0x2d1   :  { %1486 = vmatprep.subr.bf16.mxu0 %v1641_v3 }
 0x2d4   :  { %1488 = vmatpush3.bf16.msra.mxu0 %v1751_v11 }
 0x2d5   :  { %1495 = vmatprep.subr.bf16.mxu0 %v1641_v3 }
 0x3a2   :  { %v390_v63 = vpop.f32.mrb[2].mxu0 }
 0x3a3   :  { %v391_v0 = vadd.f32 %v390_v63, %v321_v62  ;;  %v1381_v1 = vpop.f32.mrb[3].mxu0 }
 0x3a4   :  { %v648_v1 = vld [vmem:[%s2004_s5] sm:$0x1] }
 0x3a5   :  { %403 = vrot.lane.b32.xlu1 %v391_v0, %s1644_s28  ;;  %v395_v5 = vadd.f32 %v394_v2, %v391_v0 }
 0x3a7   :  { %v1268_v7 = vmul.f32 -1.442695, %v395_v5 }
 0x3a9   :  { %1534 = vpow2.f32 %v1268_v7 }
 0x3b3   :  { %v1535_v8 = vpop.eup %1534 }
 0x3b4   :  { %v399_v9 = vadd.f32 1.0, %v1535_v8  ;;  %v721_v8 = vld [vmem:[#allocation3 + $0x4] sm:$0x1] }
 0x3b6   :  { %1536 = vrcp.f32 %v399_v9 }
 0x3c0   :  { %v1537_v10 = vpop.eup %1536 }
 0x3c1   :  { %v413_v17 = vsub.f32 1.0, %v1537_v10  ;;  %v419_v19 = vmul.f32 %v1537_v10, %v311_v60 }
 0x417   :  { %v404_v12 = vpop.permute.xlu1 %403 }
 0x418   :  { %v406_v13 = vmul.f32 %v1537_v10, %v404_v12 }
 0x41a   :  { %408 = vrot.lane.b32.xlu0 %v406_v13, %s1644_s28 }
 0x48c   :  { %v409_v14 = vpop.permute.xlu0 %408 }
 0x48d   :  { %v411_v15 = vadd.f32 %v409_v14, %v394_v2 }
 0x48f   :  { %1538 = vtanh.f32 %v411_v15 }
 0x499   :  { %v1539_v16 = vpop.eup %1538 }
 0x49a   :  { %415 = vrot.lane.b32.xlu1 %v1539_v16, %s1645_s4 }
 0x50c   :  { %v416_v18 = vpop.permute.xlu1 %415 }
 0x50d   :  { %v418_v20 = vmul.f32 %v416_v18, %v413_v17 }
 0x50f   :  { %v420_v21 = vadd.f32 %v419_v19, %v418_v20 }
 0x511   :  { %422 = vrot.lane.b32.xlu0 %v420_v21, %s1645_s4 }
 0x583   :  { %v423_v22 = vpop.permute.xlu0 %422 }
 0x584   :  { %425 = vst.msk [vmem:[#allocation4 + $0x1] sm:$0x1] %vm46_vm2, %v423_v22  ;;  %1391 = vmatmul.mubr.msk.f32.vlgmr.msra.gmra.mrb[2].mxu1 %vm123_vm1, %v423_v22 }
 0x585   :  { %1491 = vmatpush3.bf16.msra.mxu1 %v1726_v4  ;;  %1412 = vmatprep.mubr.msk.f32.mxu1 %vm1642_vm0, %v1643_v6 }
 0x586   :  { %1492 = vmatprep.subr.bf16.mxu1 %v1641_v3 }
 0x589   :  { %1494 = vmatpush3.bf16.msra.mxu1 %v1751_v11 }
 0x58a   :  { %1501 = vmatprep.subr.bf16.mxu1 %v1641_v3 }
 0x657   :  { %v499_v24 = vpop.f32.mrb[2].mxu1 }
 0x658   :  { %v500_v25 = vadd.f32 %v499_v24, %v430_v23  ;;  %v1392_v26 = vpop.f32.mrb[3].mxu1 }
 0x659   :  { %v757_v26 = vld [vmem:[%s2004_s5] sm:$0x1] }
 0x65a   :  { %512 = vrot.lane.b32.xlu1 %v500_v25, %s1644_s28  ;;  %v504_v28 = vadd.f32 %v503_v27, %v500_v25 }
 0x65c   :  { %v1270_v29 = vmul.f32 -1.442695, %v504_v28 }
 0x65e   :  { %1540 = vpow2.f32 %v1270_v29 }
 0x668   :  { %v1541_v30 = vpop.eup %1540 }
 0x669   :  { %v508_v31 = vadd.f32 1.0, %v1541_v30  ;;  %v830_v30 = vld [vmem:[#allocation3 + $0x5] sm:$0x1] }
 0x66b   :  { %1542 = vrcp.f32 %v508_v31 }
 0x675   :  { %v1543_v32 = vpop.eup %1542 }
 0x676   :  { %v522_v38 = vsub.f32 1.0, %v1543_v32  ;;  %v528_v40 = vmul.f32 %v1543_v32, %v420_v21 }
 0x6cc   :  { %v513_v33 = vpop.permute.xlu1 %512 }
 0x6cd   :  { %v515_v34 = vmul.f32 %v1543_v32, %v513_v33 }
 0x6cf   :  { %517 = vrot.lane.b32.xlu0 %v515_v34, %s1644_s28 }
 0x741   :  { %v518_v35 = vpop.permute.xlu0 %517 }
 0x742   :  { %v520_v36 = vadd.f32 %v518_v35, %v503_v27 }
 0x744   :  { %1544 = vtanh.f32 %v520_v36 }
 0x74e   :  { %v1545_v37 = vpop.eup %1544 }
 0x74f   :  { %524 = vrot.lane.b32.xlu1 %v1545_v37, %s1645_s4 }
 0x7c1   :  { %v525_v39 = vpop.permute.xlu1 %524 }
 0x7c2   :  { %v527_v41 = vmul.f32 %v525_v39, %v522_v38 }
 0x7c4   :  { %v529_v42 = vadd.f32 %v528_v40, %v527_v41 }
 0x7c6   :  { %531 = vrot.lane.b32.xlu0 %v529_v42, %s1645_s4 }
 0x838   :  { %v532_v43 = vpop.permute.xlu0 %531 }
 0x839   :  { %534 = vst.msk [vmem:[#allocation4 + $0x2] sm:$0x1] %vm46_vm2, %v532_v43  ;;  %1402 = vmatmul.mubr.msk.f32.vlgmr.msra.gmra.mrb[4].mxu0 %vm123_vm1, %v532_v43 }
 0x83a   :  { %1497 = vmatpush3.bf16.msra.mxu0 %v1726_v4  ;;  %1423 = vmatprep.mubr.msk.f32.mxu0 %vm1642_vm0, %v1643_v6 }
 0x83b   :  { %1498 = vmatprep.subr.bf16.mxu0 %v1641_v3 }
 0x83e   :  { %1500 = vmatpush3.bf16.msra.mxu0 %v1751_v11 }
 0x83f   :  { %1507 = vmatprep.subr.bf16.mxu0 %v1641_v3 }
 0x90c   :  { %v608_v45 = vpop.f32.mrb[4].mxu0 }
 0x90d   :  { %v609_v46 = vadd.f32 %v608_v45, %v539_v44  ;;  %v1403_v47 = vpop.f32.mrb[5].mxu0  ;;  %v866_v45 = vld [vmem:[%s2004_s5] sm:$0x1] }
 0x90f   :  { %621 = vrot.lane.b32.xlu1 %v609_v46, %s1644_s28  ;;  %v613_v49 = vadd.f32 %v612_v48, %v609_v46 }
 0x911   :  { %v1272_v50 = vmul.f32 -1.442695, %v613_v49  ;;  %v939_v49 = vld [vmem:[#allocation3 + $0x6] sm:$0x1] }
 0x913   :  { %1546 = vpow2.f32 %v1272_v50 }
 0x91d   :  { %v1547_v51 = vpop.eup %1546 }
 0x91e   :  { %v617_v52 = vadd.f32 1.0, %v1547_v51 }
 0x920   :  { %1548 = vrcp.f32 %v617_v52 }
 0x92a   :  { %v1549_v53 = vpop.eup %1548 }
 0x92b   :  { %v631_v59 = vsub.f32 1.0, %v1549_v53  ;;  %v637_v61 = vmul.f32 %v1549_v53, %v529_v42 }
 0x981   :  { %v622_v54 = vpop.permute.xlu1 %621 }
 0x982   :  { %v624_v55 = vmul.f32 %v1549_v53, %v622_v54 }
 0x984   :  { %626 = vrot.lane.b32.xlu0 %v624_v55, %s1644_s28 }
 0x9f6   :  { %v627_v56 = vpop.permute.xlu0 %626 }
 0x9f7   :  { %v629_v57 = vadd.f32 %v627_v56, %v612_v48 }
 0x9f9   :  { %1550 = vtanh.f32 %v629_v57 }
 0xa03   :  { %v1551_v58 = vpop.eup %1550 }
 0xa04   :  { %633 = vrot.lane.b32.xlu1 %v1551_v58, %s1645_s4 }
 0xa76   :  { %v634_v60 = vpop.permute.xlu1 %633 }
 0xa77   :  { %v636_v62 = vmul.f32 %v634_v60, %v631_v59 }
 0xa79   :  { %v638_v63 = vadd.f32 %v637_v61, %v636_v62 }
 0xa7b   :  { %640 = vrot.lane.b32.xlu0 %v638_v63, %s1645_s4 }
 0xaed   :  { %v641_v0 = vpop.permute.xlu0 %640 }
 0xaee   :  { %643 = vst.msk [vmem:[#allocation4 + $0x3] sm:$0x1] %vm46_vm2, %v641_v0  ;;  %1413 = vmatmul.mubr.msk.f32.vlgmr.msra.gmra.mrb[4].mxu1 %vm123_vm1, %v641_v0 }
 0xaef   :  { %1503 = vmatpush3.bf16.msra.mxu1 %v1726_v4  ;;  %1434 = vmatprep.mubr.msk.f32.mxu1 %vm1642_vm0, %v1643_v6 }
 0xaf0   :  { %1504 = vmatprep.subr.bf16.mxu1 %v1641_v3 }
 0xaf3   :  { %1506 = vmatpush3.bf16.msra.mxu1 %v1751_v11 }
 0xaf4   :  { %1513 = vmatprep.subr.bf16.mxu1 %v1641_v3 }
 0xbc1   :  { %v717_v2 = vpop.f32.mrb[4].mxu1 }
 0xbc2   :  { %v718_v5 = vadd.f32 %v717_v2, %v648_v1  ;;  %v1414_v7 = vpop.f32.mrb[5].mxu1  ;;  %v975_v1 = vld [vmem:[%s2004_s5] sm:$0x1] }
 0xbc4   :  { %730 = vrot.lane.b32.xlu1 %v718_v5, %s1644_s28  ;;  %v722_v9 = vadd.f32 %v721_v8, %v718_v5 }
 0xbc6   :  { %v1274_v10 = vmul.f32 -1.442695, %v722_v9 }
 0xbc8   :  { %1552 = vpow2.f32 %v1274_v10 }
 0xbd2   :  { %v1553_v12 = vpop.eup %1552 }
 0xbd3   :  { %v726_v13 = vadd.f32 1.0, %v1553_v12 }
 0xbd5   :  { %1554 = vrcp.f32 %v726_v13 }
 0xbdf   :  { %v1555_v14 = vpop.eup %1554 }
 0xbe0   :  { %v740_v20 = vsub.f32 1.0, %v1555_v14  ;;  %v746_v22 = vmul.f32 %v1555_v14, %v638_v63 }
 0xc36   :  { %v731_v15 = vpop.permute.xlu1 %730 }
 0xc37   :  { %v733_v16 = vmul.f32 %v1555_v14, %v731_v15 }
 0xc39   :  { %735 = vrot.lane.b32.xlu0 %v733_v16, %s1644_s28 }
 0xcab   :  { %v736_v17 = vpop.permute.xlu0 %735 }
 0xcac   :  { %v738_v18 = vadd.f32 %v736_v17, %v721_v8  ;;  %v1048_v8 = vld [vmem:[#allocation3 + $0x7] sm:$0x1] }
 0xcae   :  { %1556 = vtanh.f32 %v738_v18 }
 0xcb8   :  { %v1557_v19 = vpop.eup %1556 }
 0xcb9   :  { %742 = vrot.lane.b32.xlu1 %v1557_v19, %s1645_s4 }
 0xd2b   :  { %v743_v21 = vpop.permute.xlu1 %742 }
 0xd2c   :  { %v745_v23 = vmul.f32 %v743_v21, %v740_v20  ;;  %v1082_v20 = vld [vmem:[%s2005_s6] sm:$0xff]  ;;  %v1083_v21 = vld [vmem:[%s2005_s6 + $0x8] sm:$0xff] }
 0xd2e   :  { %v747_v24 = vadd.f32 %v746_v22, %v745_v23  ;;  %v1084_v22 = vld [vmem:[%s2005_s6 + $0x10] sm:$0xff]  ;;  %v1514_v23 = vpack.c.bf16 %v1083_v21, %v1082_v20 }
 0xd30   :  { %749 = vrot.lane.b32.xlu0 %v747_v24, %s1645_s4 }
 0xda2   :  { %v750_v25 = vpop.permute.xlu0 %749 }
 0xda3   :  { %752 = vst.msk [vmem:[#allocation4 + $0x4] sm:$0x1] %vm46_vm2, %v750_v25  ;;  %1424 = vmatmul.mubr.msk.f32.vlgmr.msra.gmra.mrb[6].mxu0 %vm123_vm1, %v750_v25 }
 0xda4   :  { %1509 = vmatpush3.bf16.msra.mxu0 %v1726_v4  ;;  %1445 = vmatprep.mubr.msk.f32.mxu0 %vm1642_vm0, %v1643_v6 }
 0xda5   :  { %1510 = vmatprep.subr.bf16.mxu0 %v1641_v3 }
 0xda8   :  { %1512 = vmatpush3.bf16.msra.mxu0 %v1751_v11 }
 0xe76   :  { %v826_v27 = vpop.f32.mrb[6].mxu0 }
 0xe77   :  { %v827_v28 = vadd.f32 %v826_v27, %v757_v26  ;;  %v1425_v29 = vpop.f32.mrb[7].mxu0 }
 0xe79   :  { %839 = vrot.lane.b32.xlu1 %v827_v28, %s1644_s28  ;;  %v831_v31 = vadd.f32 %v830_v30, %v827_v28 }
 0xe7b   :  { %v1276_v32 = vmul.f32 -1.442695, %v831_v31 }
 0xe7d   :  { %1558 = vpow2.f32 %v1276_v32 }
 0xe87   :  { %v1559_v4 = vpop.eup %1558 }
 0xe88   :  { %v835_v33 = vadd.f32 1.0, %v1559_v4 }
 0xe8a   :  { %1560 = vrcp.f32 %v835_v33 }
 0xe94   :  { %v1561_v34 = vpop.eup %1560 }
 0xe95   :  { %v849_v39 = vsub.f32 1.0, %v1561_v34  ;;  %v855_v41 = vmul.f32 %v1561_v34, %v747_v24  ;;  %v1085_v24 = vld [vmem:[%s2005_s6 + $0x18] sm:$0xff] }
 0xe96   :  { %v1517_v25 = vpack.c.bf16 %v1085_v24, %v1084_v22 }
 0xeeb   :  { %v840_v35 = vpop.permute.xlu1 %839 }
 0xeec   :  { %v842_v36 = vmul.f32 %v1561_v34, %v840_v35 }
 0xeee   :  { %844 = vrot.lane.b32.xlu0 %v842_v36, %s1644_s28 }
 0xf60   :  { %v845_v11 = vpop.permute.xlu0 %844 }
 0xf61   :  { %v847_v37 = vadd.f32 %v845_v11, %v830_v30 }
 0xf63   :  { %1562 = vtanh.f32 %v847_v37 }
 0xf6d   :  { %v1563_v38 = vpop.eup %1562 }
 0xf6e   :  { %851 = vrot.lane.b32.xlu1 %v1563_v38, %s1645_s4 }
 0xfe0   :  { %v852_v40 = vpop.permute.xlu1 %851 }
 0xfe1   :  { %v854_v42 = vmul.f32 %v852_v40, %v849_v39 }
 0xfe3   :  { %v856_v43 = vadd.f32 %v855_v41, %v854_v42 }
 0xfe5   :  { %858 = vrot.lane.b32.xlu0 %v856_v43, %s1645_s4 }
0x1057   :  { %v859_v44 = vpop.permute.xlu0 %858 }
0x1058   :  { %861 = vst.msk [vmem:[#allocation4 + $0x5] sm:$0x1] %vm46_vm2, %v859_v44  ;;  %1435 = vmatmul.mubr.msk.f32.vlgmr.msra.gmra.mrb[6].mxu1 %vm123_vm1, %v859_v44 }
0x1059   :  { %1456 = vmatprep.mubr.msk.f32.mxu1 %vm1642_vm0, %v1643_v6  ;;  %1515 = vmatpush3.bf16.msra.mxu1 %v1514_v23 }
0x105a   :  { %1516 = vmatprep.subr.bf16.mxu1 %v1641_v3  ;;  %v1281_v3 = vld [vmem:[%s2006_s7] ss:$0 sm:$0xff]  ;;  %s1594_s7 = scalar_lea.vmem %s1197_s29, 32 }
0x105d   :  { %1518 = vmatpush3.bf16.msra.mxu1 %v1517_v25 }
0x112b   :  { %v935_v46 = vpop.f32.mrb[6].mxu1 }
0x112c   :  { %v936_v47 = vadd.f32 %v935_v46, %v866_v45  ;;  %v1436_v48 = vpop.f32.mrb[7].mxu1 }
0x112e   :  { %948 = vrot.lane.b32.xlu1 %v936_v47, %s1644_s28  ;;  %v940_v50 = vadd.f32 %v939_v49, %v936_v47 }
0x1130   :  { %v1278_v51 = vmul.f32 -1.442695, %v940_v50 }
0x1132   :  { %1564 = vpow2.f32 %v1278_v51 }
0x113c   :  { %v1565_v52 = vpop.eup %1564 }
0x113d   :  { %v944_v53 = vadd.f32 1.0, %v1565_v52 }
0x113f   :  { %1566 = vrcp.f32 %v944_v53 }
0x1149   :  { %v1567_v54 = vpop.eup %1566 }
0x114a   :  { %v958_v59 = vsub.f32 1.0, %v1567_v54  ;;  %v964_v61 = vmul.f32 %v1567_v54, %v856_v43 }
0x11a0   :  { %v949_v55 = vpop.permute.xlu1 %948 }
0x11a1   :  { %v951_v56 = vmul.f32 %v1567_v54, %v949_v55 }
0x11a3   :  { %953 = vrot.lane.b32.xlu0 %v951_v56, %s1644_s28 }
0x1215   :  { %v954_v6 = vpop.permute.xlu0 %953 }
0x1216   :  { %v956_v57 = vadd.f32 %v954_v6, %v939_v49 }
0x1218   :  { %1568 = vtanh.f32 %v956_v57 }
0x1222   :  { %v1569_v58 = vpop.eup %1568 }
0x1223   :  { %960 = vrot.lane.b32.xlu1 %v1569_v58, %s1645_s4 }
0x1295   :  { %v961_v60 = vpop.permute.xlu1 %960 }
0x1296   :  { %v963_v62 = vmul.f32 %v961_v60, %v958_v59 }
0x1298   :  { %v965_v63 = vadd.f32 %v964_v61, %v963_v62 }
0x129a   :  { %967 = vrot.lane.b32.xlu0 %v965_v63, %s1645_s4 }
0x130c   :  { %v968_v0 = vpop.permute.xlu0 %967 }
0x130d   :  { %970 = vst.msk [vmem:[#allocation4 + $0x6] sm:$0x1] %vm46_vm2, %v968_v0  ;;  %1446 = vmatmul.mubr.msk.f32.vlgmr.msra.gmra.mrb[8].mxu0 %vm123_vm1, %v968_v0 }
0x13e0   :  { %v1044_v2 = vpop.f32.mrb[8].mxu0 }
0x13e1   :  { %v1045_v5 = vadd.f32 %v1044_v2, %v975_v1  ;;  %v1447_v7 = vpop.f32.mrb[9].mxu0 }
0x13e3   :  { %1057 = vrot.lane.b32.xlu1 %v1045_v5, %s1644_s28  ;;  %v1049_v9 = vadd.f32 %v1048_v8, %v1045_v5 }
0x13e5   :  { %v1280_v10 = vmul.f32 -1.442695, %v1049_v9 }
0x13e7   :  { %1570 = vpow2.f32 %v1280_v10 }
0x13f1   :  { %v1571_v12 = vpop.eup %1570 }
0x13f2   :  { %v1053_v13 = vadd.f32 1.0, %v1571_v12 }
0x13f4   :  { %1572 = vrcp.f32 %v1053_v13 }
0x13fe   :  { %v1573_v14 = vpop.eup %1572 }
0x13ff   :  { %v1067_v26 = vsub.f32 1.0, %v1573_v14  ;;  %v1073_v28 = vmul.f32 %v1573_v14, %v965_v63 }
0x1455   :  { %v1058_v15 = vpop.permute.xlu1 %1057 }
0x1456   :  { %v1060_v16 = vmul.f32 %v1573_v14, %v1058_v15 }
0x1458   :  { %1062 = vrot.lane.b32.xlu0 %v1060_v16, %s1644_s28 }
0x14ca   :  { %v1063_v17 = vpop.permute.xlu0 %1062 }
0x14cb   :  { %v1065_v18 = vadd.f32 %v1063_v17, %v1048_v8 }
0x14cd   :  { %1574 = vtanh.f32 %v1065_v18 }
0x14d7   :  { %v1575_v19 = vpop.eup %1574 }
0x14d8   :  { %1069 = vrot.lane.b32.xlu1 %v1575_v19, %s1645_s4 }
0x154a   :  { %v1070_v27 = vpop.permute.xlu1 %1069 }
0x154b   :  { %v1072_v29 = vmul.f32 %v1070_v27, %v1067_v26 }
0x154d   :  { %v1074_v30 = vadd.f32 %v1073_v28, %v1072_v29 }
0x154f   :  { %1076 = vrot.lane.b32.xlu0 %v1074_v30, %s1645_s4  ;;  %s1590_s4 = scalar_lea.vmem %s1197_s29, 16 }
0x1550   :  { %p1591_p5 = scmp.ne.s32.totalorder %s1197_s29, %s1590_s4  ;;  %p1596_p7 = scmp.lt.s32.totalorder %s1594_s7, %s1590_s4 }
0x1552   :  { %p1597_p8 = por %p1596_p7, %p1595_p6 }
0x1554   :  { %p1598_p9 = pnand %p1597_p8, %p1591_p5 }
0x15c1   :  { %v1077_v31 = vpop.permute.xlu0 %1076 }
0x15c2   :  { %1079 = vst.msk [vmem:[#allocation4 + $0x7] sm:$0x1] %vm46_vm2, %v1077_v31  ;;  %1080 = vst.msk [vmem:[#allocation9] sm:$0x1] %vm46_vm2, %v1077_v31 }
0x15c9   :  { %v1081_v32 = vld [vmem:[#allocation4] sm:$0xff] }
0x15ca   :  { %1457 = vmatmul.mubr.msk.f32.vlgmr.msra.gmra.mrb[8].mxu1 %vm123_vm1, %v1081_v32 }
0x169d   :  { %v1162_v4 = vpop.f32.mrb[8].mxu1 }
0x169e   :  { %v1163_v33 = vadd.f32 %v1281_v3, %v1162_v4  ;;  %v1458_v34 = vpop.f32.mrb[9].mxu1 }
0x16a0   :  { %v1167_v35 = vsel %vm1166_vm4, %v1163_v33, -inf }
0x16a1   :  { %1168 = vmax.xlane.f32.xlu1 %v1167_v35 }
0x172e   :  { %v1169_v36 = vpop.xlane.xlu1 %1168 }
0x172f   :  { %v1170_v11 = vsub.f32 %v1163_v33, %v1169_v36 }
0x1731   :  { %v1171_v37 = vmul.f32 1.442695, %v1170_v11 }
0x1733   :  { %1576 = vpow2.f32 %v1171_v37 }
0x173d   :  { %v1577_v38 = vpop.eup %1576 }
0x173e   :  { %v1173_v39 = vsel %vm1166_vm4, %v1577_v38, 0.0 }
0x173f   :  { %1174 = vadd.xlane.f32.xlu0 %v1173_v39 }
0x1740   :  { %1601 = shalt.err (!%p1598_p9)
}
0x1741   :  { %s1602_s12 = scalar_lea.hbm %s2009_s10, 16 }
0x1742   :  { %p1603_p10 = scmp.ne.s32.totalorder %s2009_s10, %s1602_s12  ;;  %p1606_p11 = scmp.lt.u32.totalorder %s1602_s12, %s2009_s10 }
0x1744   :  { %p1608_p12 = pnand %p1606_p11, %p1603_p10 }
0x1746   :  { %1611 = shalt.err (!%p1608_p12)
}
0x1747   :  { %1199 = dma.vmem_to_hbm [thread:$0]  %s1197_s29, 16, %s2009_s10, [#allocation10]  }
0x1748   :  { %s1648_s18 = smov [#allocation7]  }
0x1749   :  { %s1186_s2 = sshll.u32 %s1648_s18, 4  ;;  %s1187_s2 = int_to_ptr.vmem [resolvable:$true] %s1186_s2 }
0x174a   :  { %s1612_s19 = scalar_lea.vmem %s1187_s2, 128  ;;  %p1617_p0 = scmp.lt.s32.totalorder %s1187_s2, %s1187_s2 }
0x174b   :  { %p1613_p13 = scmp.ne.s32.totalorder %s1187_s2, %s1612_s19  ;;  %p1618_p1 = scmp.lt.s32.totalorder %s1612_s19, %s1612_s19 }
0x174d   :  { %p1619_p2 = por %p1618_p1, %p1617_p0 }
0x174f   :  { %p1620_p3 = pnand %p1619_p2, %p1613_p13 }
0x17cc   :  { %v1175_v40 = vpop.xlane.xlu0 %1174 }
0x17cd   :  { %1578 = vlog2.f32 %v1175_v40 }
0x17d7   :  { %v1579_v41 = vpop.eup %1578 }
0x17d8   :  { %v1177_v42 = vmul.f32 0.6931472, %v1579_v41 }
0x17da   :  { %v1178_v43 = vsub.f32 %v1170_v11, %v1177_v42 }
0x17dc   :  { %1179 = vst.msk [vmem:[#allocation7] sm:$0xff] %vm1166_vm4, %v1178_v43 }
0x17dd   :  { %1623 = shalt.err (!%p1620_p3)
}
0x17de   :  { %s1624_s10 = scalar_lea.hbm %s2008_s9, 128 }
0x17df   :  { %p1625_p4 = scmp.ne.s32.totalorder %s2008_s9, %s1624_s10  ;;  %p1628_p5 = scmp.lt.u32.totalorder %s1624_s10, %s2008_s9 }
0x17e1   :  { %p1630_p6 = pnand %p1628_p5, %p1625_p4 }
0x17e3   :  { %1633 = shalt.err (!%p1630_p6)
}
0x17e4   :  { %1189 = dma.vmem_to_hbm [thread:$0]  %s1187_s2, 128, %s2008_s9, [#allocation8]  }
0x17e5   :  { %1636 = dma.done.wait [#allocation8], 128  }
0x17e6   :  { %1637 = vsyncadd [#allocation8], 4294967168 }
0x17e7   :  { %1638 = dma.done.wait [#allocation10], 16  }
0x17e8   :  { %1639 = vsyncadd [#allocation10], 4294967280 }
0x17e9   :  { %1206 = vsyncpa [#allocation8], 1 }
0x17ea   :  { %1207 = vsyncpa [#allocation10], 1 }

</bundles_post_ra>
